<compile_context>
chip_gen: v7x
topology: tpu7x:2x2x1
jax: 0.10.0
libtpu: 0.0.40
codegen_flags: <defaults>
</compile_context>

<pallas_src>
import functools

import jax
import jax.numpy as jnp
from jax.experimental import pallas as pl
from jax.experimental.pallas import tpu as pltpu


# ----------------------------------------------------------------------------
# Kernel 1: fused NAT block (QKV -> attention -> proj), one batch per grid step
# ----------------------------------------------------------------------------
def _nat_block_kernel(x_ref, qkv_w_ref, qkv_b_ref, bias_ref, proj_w_ref,
                      proj_b_ref, o_ref, *, num_heads, scale):
    x = x_ref[0]                                              # (L, C)
    L, C = x.shape
    Dh = C // num_heads

    # One well-shaped MXU matmul for all of Q, K, V.
    qkv = (jnp.dot(x, qkv_w_ref[...], preferred_element_type=jnp.float32)
           + qkv_b_ref[...])                                  # (L, 3C)

    pw = proj_w_ref[...]                                      # (C, C), resident

    # Per-head attention; head-merge + output projection fused as
    #   concat_h(o_h) @ proj_w == sum_h o_h @ proj_w[h*Dh:(h+1)*Dh, :]
    # so we accumulate directly into a lane-dense (L, C) tile.
    acc = jnp.zeros((L, C), jnp.float32)
    for h in range(num_heads):
        q = qkv[:, h * Dh:(h + 1) * Dh]                       # (L, Dh)
        k = qkv[:, C + h * Dh:C + (h + 1) * Dh]               # (L, Dh)
        v = qkv[:, 2 * C + h * Dh:2 * C + (h + 1) * Dh]       # (L, Dh)

        s = jax.lax.dot_general(q, k, (((1,), (1,)), ((), ())),
                                preferred_element_type=jnp.float32)
        s = s * scale + bias_ref[h]                           # (L, L)

        m = jnp.max(s, axis=-1, keepdims=True)
        p = jnp.exp(s - m)
        inv = pl.reciprocal(jnp.sum(p, axis=-1, keepdims=True), approx=True)
        o_h = jnp.dot(p, v, preferred_element_type=jnp.float32) * inv  # (L, Dh)

        acc = acc + jnp.dot(o_h, pw[h * Dh:(h + 1) * Dh, :],
                            preferred_element_type=jnp.float32)

    o_ref[0] = (acc + proj_b_ref[...]).astype(o_ref.dtype)


# ----------------------------------------------------------------------------
# Kernel 2: fused depthwise 3x3 conv + (NAT + conv) add + final Linear
# ----------------------------------------------------------------------------
def _conv_merge_kernel(xp_ref, xnat_ref, dww_ref, dwb_ref, lin_w_ref,
                       lin_b_ref, o_ref, *, H, W):
    xp = xp_ref[0]                                            # (H+2, W+2, C)
    w = dww_ref[...]                                          # (9, C)
    C = xp.shape[-1]

    acc = jnp.zeros((H, W, C), jnp.float32)
    for di in range(3):
        for dj in range(3):
            acc = acc + xp[di:di + H, dj:dj + W, :] * w[di * 3 + dj]
    conv = acc + dwb_ref[...]                                 # (H, W, C)

    s = conv.reshape(H * W, C) + xnat_ref[0]                  # (L, C)
    o_ref[0] = (jnp.dot(s, lin_w_ref[...], preferred_element_type=jnp.float32)
                + lin_b_ref[...]).astype(o_ref.dtype)


# ----------------------------------------------------------------------------
# NAT bias / mask construction (plain JAX — parameter & index glue only)
# ----------------------------------------------------------------------------
def nat_bias_matrix(rpb, H, W, K):
    """(num_heads, L, L) bias implementing the NAT clamped neighbourhood window
    + relative positional bias (rpb: (nH, 2K-1, 2K-1))."""
    nH = rpb.shape[0]

    def axis_terms(S):
        idx = jnp.arange(S)
        start = jnp.clip(idx - K // 2, 0, max(S - K, 0))       # window start
        rel = idx[None, :] - idx[:, None] + (K - 1)            # (S, S)
        in_win = (idx[None, :] >= start[:, None]) & (
            idx[None, :] < start[:, None] + K
        )
        return rel, in_win

    rel_i, win_i = axis_terms(H)
    rel_j, win_j = axis_terms(W)
    a = rel_i[:, None, :, None]                                # (H, 1, H, 1)
    b = rel_j[None, :, None, :]                                # (1, W, 1, W)
    bias = rpb[:, a, b]                                        # (nH, H, W, H, W)
    mask = win_i[:, None, :, None] & win_j[None, :, None, :]   # (H, W, H, W)
    bias = jnp.where(mask[None], bias, jnp.float32(-1e30))
    return bias.reshape(nH, H * W, H * W).astype(jnp.float32)


# ----------------------------------------------------------------------------
# Pallas wrappers
# ----------------------------------------------------------------------------
def pallas_nat_block(x_blc, p, num_heads, K, H, W):
    B, L, C = x_blc.shape
    Dh = C // num_heads
    scale = Dh ** -0.5
    bias = nat_bias_matrix(p["rpb"], H, W, K)                  # (nH, L, L)
    kern = functools.partial(_nat_block_kernel, num_heads=num_heads, scale=scale)
    return pl.pallas_call(
        kern,
        out_shape=jax.ShapeDtypeStruct((B, L, C), jnp.float32),
        grid=(B,),
        in_specs=[
            pl.BlockSpec((1, L, C), lambda b: (b, 0, 0)),
            pl.BlockSpec((C, 3 * C), lambda b: (0, 0)),        # constant -> DMA'd once
            pl.BlockSpec((1, 3 * C), lambda b: (0, 0)),
            pl.BlockSpec((num_heads, L, L), lambda b: (0, 0, 0)),
            pl.BlockSpec((C, C), lambda b: (0, 0)),
            pl.BlockSpec((1, C), lambda b: (0, 0)),
        ],
        out_specs=pl.BlockSpec((1, L, C), lambda b: (b, 0, 0)),
        compiler_params=pltpu.CompilerParams(dimension_semantics=("parallel",)),
    )(x_blc, p["qkv_w"], p["qkv_b"].reshape(1, 3 * C), bias,
      p["proj_w"], p["proj_b"].reshape(1, C))


def pallas_conv_merge(xp_nhwc, x_nat_blc, params, H, W):
    B = xp_nhwc.shape[0]
    C = xp_nhwc.shape[-1]
    L = H * W
    kern = functools.partial(_conv_merge_kernel, H=H, W=W)
    return pl.pallas_call(
        kern,
        out_shape=jax.ShapeDtypeStruct((B, L, C), jnp.float32),
        grid=(B,),
        in_specs=[
            pl.BlockSpec((1, H + 2, W + 2, C), lambda b: (b, 0, 0, 0)),
            pl.BlockSpec((1, L, C), lambda b: (b, 0, 0)),
            pl.BlockSpec((9, C), lambda b: (0, 0)),
            pl.BlockSpec((1, C), lambda b: (0, 0)),
            pl.BlockSpec((C, C), lambda b: (0, 0)),
            pl.BlockSpec((1, C), lambda b: (0, 0)),
        ],
        out_specs=pl.BlockSpec((1, L, C), lambda b: (b, 0, 0)),
        compiler_params=pltpu.CompilerParams(dimension_semantics=("parallel",)),
    )(xp_nhwc, x_nat_blc, params["dw_w"].reshape(9, C),
      params["dw_b"].reshape(1, C), params["lin_w"],
      params["lin_b"].reshape(1, C))


def convnat_forward(x_blc, x_size, params, *, num_heads=4, kernel_size=31):
    B, N, C = x_blc.shape
    H, W = x_size
    assert N == H * W

    # (B, L, C) has the same element ordering as the PyTorch
    # blc_to_bchw -> permute(0,2,3,1) NHWC path, so no relayout is needed.
    x_nat = pallas_nat_block(x_blc, params["nat1"], num_heads, kernel_size, H, W)
    x_nat = pallas_nat_block(x_nat, params["nat2"], num_heads, kernel_size, H, W)

    # Halo pad for the 3x3 depthwise conv (tiny HBM copy at these sizes); the
    # conv, the NAT+conv add and the final Linear are fused into one kernel.
    xp = jnp.pad(x_blc.reshape(B, H, W, C), ((0, 0), (1, 1), (1, 1), (0, 0)))
    out = pallas_conv_merge(xp, x_nat, params, H, W)
    return out                                                 # (B, N, C)


# ----------------------------------------------------------------------------
# Deterministic parameter init (synthetic; weights stored as (in, out))
# ----------------------------------------------------------------------------
def init_nat_params(key, C, num_heads, K):
    k1, k2, k3 = jax.random.split(key, 3)
    return dict(
        qkv_w=0.02 * jax.random.normal(k1, (C, 3 * C), jnp.float32),
        qkv_b=jnp.zeros((3 * C,), jnp.float32),
        rpb=0.02 * jax.random.normal(k2, (num_heads, 2 * K - 1, 2 * K - 1), jnp.float32),
        proj_w=0.02 * jax.random.normal(k3, (C, C), jnp.float32),
        proj_b=jnp.zeros((C,), jnp.float32),
    )


def init_params(key, C, num_heads, K):
    k1, k2, k3, k4 = jax.random.split(key, 4)
    return dict(
        nat1=init_nat_params(k1, C, num_heads, K),
        nat2=init_nat_params(k2, C, num_heads, K),
        dw_w=0.1 * jax.random.normal(k3, (3, 3, C), jnp.float32),
        dw_b=jnp.zeros((C,), jnp.float32),
        lin_w=0.02 * jax.random.normal(k4, (C, C), jnp.float32),
        lin_b=jnp.zeros((C,), jnp.float32),
    )


if __name__ == "__main__":
    B, C, H, W = 2, 32, 8, 8          # dim=32 -> head_dim=8 with 4 heads
    num_heads = 4
    kernel_size = 31                  # NAT kernel_size from the module

    root = jax.random.PRNGKey(0)
    k_params, k_x = jax.random.split(root)
    params = init_params(k_params, C, num_heads, kernel_size)
    x = jax.random.normal(k_x, (B, H * W, C), jnp.float32)

    fwd = jax.jit(functools.partial(convnat_forward, num_heads=num_heads,
                                    kernel_size=kernel_size),
                  static_argnames=("x_size",))
    out = fwd(x, (H, W), params)
    out = jax.block_until_ready(out)
    assert out.shape == (B, H * W, C)
    assert bool(jnp.all(jnp.isfinite(out)))
    print("KERNEL_OK")
</pallas_src>

<mosaic_0001>
module attributes {stable_mosaic.version = 11 : i64} {
  func.func private @main(%arg0: i32) attributes {dimension_semantics = [#tpu.dimension_semantics<core_parallel>], iteration_bounds = array<i64: 2>, tpu.core_type = #tpu.core_type<sc_scalar_subcore>, window_params = []} {
    return
  }
}

module attributes {stable_mosaic.version = 11 : i64} {
  func.func private @main(%arg0: i32) attributes {dimension_semantics = [#tpu.dimension_semantics<core_parallel>], iteration_bounds = array<i64: 2>, tpu.core_type = #tpu.core_type<sc_scalar_subcore>, window_params = []} {
    return
  }
}

module attributes {stable_mosaic.version = 11 : i64} {
  func.func @_nat_block_kernel(%arg0: i32, %arg1: memref<1x64x32xf32, #tpu.memory_space<vmem>>, %arg2: memref<32x96xf32, #tpu.memory_space<vmem>>, %arg3: memref<1x96xf32, #tpu.memory_space<vmem>>, %arg4: memref<4x64x64xf32, #tpu.memory_space<vmem>>, %arg5: memref<32x32xf32, #tpu.memory_space<vmem>>, %arg6: memref<1x32xf32, #tpu.memory_space<vmem>>, %arg7: memref<1x64x32xf32, #tpu.memory_space<vmem>>) attributes {dimension_semantics = [#tpu.dimension_semantics<parallel>], iteration_bounds = array<i64: 2>, scalar_prefetch = 0 : i64, scratch_operands = 0 : i64, tpu.core_type = #tpu.core_type<tc>, window_params = [{transform_indices = @transform_0, window_bounds = array<i64: 1, 64, 32>}, {pipeline_mode = #tpu.pipeline_mode<synchronous>, transform_indices = @transform_1, window_bounds = array<i64: 32, 96>}, {pipeline_mode = #tpu.pipeline_mode<synchronous>, transform_indices = @transform_2, window_bounds = array<i64: 1, 96>}, {pipeline_mode = #tpu.pipeline_mode<synchronous>, transform_indices = @transform_3, window_bounds = array<i64: 4, 64, 64>}, {pipeline_mode = #tpu.pipeline_mode<synchronous>, transform_indices = @transform_4, window_bounds = array<i64: 32, 32>}, {pipeline_mode = #tpu.pipeline_mode<synchronous>, transform_indices = @transform_5, window_bounds = array<i64: 1, 32>}, {transform_indices = @transform_6, window_bounds = array<i64: 1, 64, 32>}]} {
    %c0 = arith.constant 0 : index
    %c0_0 = arith.constant 0 : index
    %c0_1 = arith.constant 0 : index
    %0 = vector.load %arg1[%c0, %c0_0, %c0_1] : memref<1x64x32xf32, #tpu.memory_space<vmem>>, vector<1x64x32xf32>
    %1 = vector.shape_cast %0 : vector<1x64x32xf32> to vector<64x32xf32>
    %c0_2 = arith.constant 0 : index
    %c0_3 = arith.constant 0 : index
    %2 = vector.load %arg2[%c0_2, %c0_3] : memref<32x96xf32, #tpu.memory_space<vmem>>, vector<32x96xf32>
    %cst = arith.constant dense<0.000000e+00> : vector<64x96xf32>
    %3 = tpu.matmul %1, %2, %cst {dimension_numbers = #tpu.dot_dimension_numbers<[1], [0], [0], [1], [0, 0, 1, 1], [], []>} : vector<64x32xf32>, vector<32x96xf32>, vector<64x96xf32> -> vector<64x96xf32>
    %c0_4 = arith.constant 0 : index
    %c0_5 = arith.constant 0 : index
    %4 = vector.load %arg3[%c0_4, %c0_5] : memref<1x96xf32, #tpu.memory_space<vmem>>, vector<1x96xf32>
    %5 = vector.broadcast %4 : vector<1x96xf32> to vector<64x96xf32>
    %6 = arith.addf %3, %5 : vector<64x96xf32>
    %c0_6 = arith.constant 0 : index
    %c0_7 = arith.constant 0 : index
    %7 = vector.load %arg5[%c0_6, %c0_7] : memref<32x32xf32, #tpu.memory_space<vmem>>, vector<32x32xf32>
    %cst_8 = arith.constant 0.000000e+00 : f32
    %8 = vector.broadcast %cst_8 : f32 to vector<64x32xf32>
    %9 = vector.extract_strided_slice %6 {offsets = [0, 0], sizes = [64, 8], strides = [1, 1]} : vector<64x96xf32> to vector<64x8xf32>
    %10 = vector.extract_strided_slice %6 {offsets = [0, 32], sizes = [64, 8], strides = [1, 1]} : vector<64x96xf32> to vector<64x8xf32>
    %11 = vector.extract_strided_slice %6 {offsets = [0, 64], sizes = [64, 8], strides = [1, 1]} : vector<64x96xf32> to vector<64x8xf32>
    %cst_9 = arith.constant dense<0.000000e+00> : vector<64x64xf32>
    %12 = tpu.matmul %9, %10, %cst_9 {dimension_numbers = #tpu.dot_dimension_numbers<[1], [1], [0], [0], [0, 0, 1, 0], [], []>} : vector<64x8xf32>, vector<64x8xf32>, vector<64x64xf32> -> vector<64x64xf32>
    %cst_10 = arith.constant 0.353553385 : f32
    %13 = vector.broadcast %cst_10 : f32 to vector<64x64xf32>
    %14 = arith.mulf %12, %13 : vector<64x64xf32>
    %c0_11 = arith.constant 0 : index
    %c0_12 = arith.constant 0 : index
    %c0_13 = arith.constant 0 : index
    %15 = vector.load %arg4[%c0_11, %c0_12, %c0_13] : memref<4x64x64xf32, #tpu.memory_space<vmem>>, vector<1x64x64xf32>
    %16 = vector.shape_cast %15 : vector<1x64x64xf32> to vector<64x64xf32>
    %17 = arith.addf %14, %16 : vector<64x64xf32>
    %cst_14 = arith.constant dense<0xFF800000> : vector<64xf32>
    %18 = vector.multi_reduction <maximumf>, %17, %cst_14 [1] : vector<64x64xf32> to vector<64xf32>
    %19 = vector.shape_cast %18 : vector<64xf32> to vector<64x1xf32>
    %20 = vector.broadcast %19 : vector<64x1xf32> to vector<64x64xf32>
    %21 = arith.subf %17, %20 : vector<64x64xf32>
    %22 = math.exp %21 : vector<64x64xf32>
    %cst_15 = arith.constant dense<0.000000e+00> : vector<64xf32>
    %23 = vector.multi_reduction <add>, %22, %cst_15 [1] : vector<64x64xf32> to vector<64xf32>
    %24 = vector.shape_cast %23 : vector<64xf32> to vector<64x1xf32>
    %25 = tpu.reciprocal %24 {approx = true} : vector<64x1xf32> -> vector<64x1xf32>
    %cst_16 = arith.constant dense<0.000000e+00> : vector<64x8xf32>
    %26 = tpu.matmul %22, %11, %cst_16 {dimension_numbers = #tpu.dot_dimension_numbers<[1], [0], [0], [1], [0, 0, 1, 1], [], []>} : vector<64x64xf32>, vector<64x8xf32>, vector<64x8xf32> -> vector<64x8xf32>
    %27 = vector.broadcast %25 : vector<64x1xf32> to vector<64x8xf32>
    %28 = arith.mulf %26, %27 : vector<64x8xf32>
    %29 = vector.extract_strided_slice %7 {offsets = [0, 0], sizes = [8, 32], strides = [1, 1]} : vector<32x32xf32> to vector<8x32xf32>
    %cst_17 = arith.constant dense<0.000000e+00> : vector<64x32xf32>
    %30 = tpu.matmul %28, %29, %cst_17 {dimension_numbers = #tpu.dot_dimension_numbers<[1], [0], [0], [1], [0, 0, 1, 1], [], []>} : vector<64x8xf32>, vector<8x32xf32>, vector<64x32xf32> -> vector<64x32xf32>
    %31 = arith.addf %8, %30 : vector<64x32xf32>
    %32 = vector.extract_strided_slice %6 {offsets = [0, 8], sizes = [64, 8], strides = [1, 1]} : vector<64x96xf32> to vector<64x8xf32>
    %33 = vector.extract_strided_slice %6 {offsets = [0, 40], sizes = [64, 8], strides = [1, 1]} : vector<64x96xf32> to vector<64x8xf32>
    %34 = vector.extract_strided_slice %6 {offsets = [0, 72], sizes = [64, 8], strides = [1, 1]} : vector<64x96xf32> to vector<64x8xf32>
    %cst_18 = arith.constant dense<0.000000e+00> : vector<64x64xf32>
    %35 = tpu.matmul %32, %33, %cst_18 {dimension_numbers = #tpu.dot_dimension_numbers<[1], [1], [0], [0], [0, 0, 1, 0], [], []>} : vector<64x8xf32>, vector<64x8xf32>, vector<64x64xf32> -> vector<64x64xf32>
    %cst_19 = arith.constant 0.353553385 : f32
    %36 = vector.broadcast %cst_19 : f32 to vector<64x64xf32>
    %37 = arith.mulf %35, %36 : vector<64x64xf32>
    %c1 = arith.constant 1 : index
    %c0_20 = arith.constant 0 : index
    %c0_21 = arith.constant 0 : index
    %38 = vector.load %arg4[%c1, %c0_20, %c0_21] : memref<4x64x64xf32, #tpu.memory_space<vmem>>, vector<1x64x64xf32>
    %39 = vector.shape_cast %38 : vector<1x64x64xf32> to vector<64x64xf32>
    %40 = arith.addf %37, %39 : vector<64x64xf32>
    %cst_22 = arith.constant dense<0xFF800000> : vector<64xf32>
    %41 = vector.multi_reduction <maximumf>, %40, %cst_22 [1] : vector<64x64xf32> to vector<64xf32>
    %42 = vector.shape_cast %41 : vector<64xf32> to vector<64x1xf32>
    %43 = vector.broadcast %42 : vector<64x1xf32> to vector<64x64xf32>
    %44 = arith.subf %40, %43 : vector<64x64xf32>
    %45 = math.exp %44 : vector<64x64xf32>
    %cst_23 = arith.constant dense<0.000000e+00> : vector<64xf32>
    %46 = vector.multi_reduction <add>, %45, %cst_23 [1] : vector<64x64xf32> to vector<64xf32>
    %47 = vector.shape_cast %46 : vector<64xf32> to vector<64x1xf32>
    %48 = tpu.reciprocal %47 {approx = true} : vector<64x1xf32> -> vector<64x1xf32>
    %cst_24 = arith.constant dense<0.000000e+00> : vector<64x8xf32>
    %49 = tpu.matmul %45, %34, %cst_24 {dimension_numbers = #tpu.dot_dimension_numbers<[1], [0], [0], [1], [0, 0, 1, 1], [], []>} : vector<64x64xf32>, vector<64x8xf32>, vector<64x8xf32> -> vector<64x8xf32>
    %50 = vector.broadcast %48 : vector<64x1xf32> to vector<64x8xf32>
    %51 = arith.mulf %49, %50 : vector<64x8xf32>
    %52 = vector.extract_strided_slice %7 {offsets = [8, 0], sizes = [8, 32], strides = [1, 1]} : vector<32x32xf32> to vector<8x32xf32>
    %cst_25 = arith.constant dense<0.000000e+00> : vector<64x32xf32>
    %53 = tpu.matmul %51, %52, %cst_25 {dimension_numbers = #tpu.dot_dimension_numbers<[1], [0], [0], [1], [0, 0, 1, 1], [], []>} : vector<64x8xf32>, vector<8x32xf32>, vector<64x32xf32> -> vector<64x32xf32>
    %54 = arith.addf %31, %53 : vector<64x32xf32>
    %55 = vector.extract_strided_slice %6 {offsets = [0, 16], sizes = [64, 8], strides = [1, 1]} : vector<64x96xf32> to vector<64x8xf32>
    %56 = vector.extract_strided_slice %6 {offsets = [0, 48], sizes = [64, 8], strides = [1, 1]} : vector<64x96xf32> to vector<64x8xf32>
    %57 = vector.extract_strided_slice %6 {offsets = [0, 80], sizes = [64, 8], strides = [1, 1]} : vector<64x96xf32> to vector<64x8xf32>
    %cst_26 = arith.constant dense<0.000000e+00> : vector<64x64xf32>
    %58 = tpu.matmul %55, %56, %cst_26 {dimension_numbers = #tpu.dot_dimension_numbers<[1], [1], [0], [0], [0, 0, 1, 0], [], []>} : vector<64x8xf32>, vector<64x8xf32>, vector<64x64xf32> -> vector<64x64xf32>
    %cst_27 = arith.constant 0.353553385 : f32
    %59 = vector.broadcast %cst_27 : f32 to vector<64x64xf32>
    %60 = arith.mulf %58, %59 : vector<64x64xf32>
    %c2 = arith.constant 2 : index
    %c0_28 = arith.constant 0 : index
    %c0_29 = arith.constant 0 : index
    %61 = vector.load %arg4[%c2, %c0_28, %c0_29] : memref<4x64x64xf32, #tpu.memory_space<vmem>>, vector<1x64x64xf32>
    %62 = vector.shape_cast %61 : vector<1x64x64xf32> to vector<64x64xf32>
    %63 = arith.addf %60, %62 : vector<64x64xf32>
    %cst_30 = arith.constant dense<0xFF800000> : vector<64xf32>
    %64 = vector.multi_reduction <maximumf>, %63, %cst_30 [1] : vector<64x64xf32> to vector<64xf32>
    %65 = vector.shape_cast %64 : vector<64xf32> to vector<64x1xf32>
    %66 = vector.broadcast %65 : vector<64x1xf32> to vector<64x64xf32>
    %67 = arith.subf %63, %66 : vector<64x64xf32>
    %68 = math.exp %67 : vector<64x64xf32>
    %cst_31 = arith.constant dense<0.000000e+00> : vector<64xf32>
    %69 = vector.multi_reduction <add>, %68, %cst_31 [1] : vector<64x64xf32> to vector<64xf32>
    %70 = vector.shape_cast %69 : vector<64xf32> to vector<64x1xf32>
    %71 = tpu.reciprocal %70 {approx = true} : vector<64x1xf32> -> vector<64x1xf32>
    %cst_32 = arith.constant dense<0.000000e+00> : vector<64x8xf32>
    %72 = tpu.matmul %68, %57, %cst_32 {dimension_numbers = #tpu.dot_dimension_numbers<[1], [0], [0], [1], [0, 0, 1, 1], [], []>} : vector<64x64xf32>, vector<64x8xf32>, vector<64x8xf32> -> vector<64x8xf32>
    %73 = vector.broadcast %71 : vector<64x1xf32> to vector<64x8xf32>
    %74 = arith.mulf %72, %73 : vector<64x8xf32>
    %75 = vector.extract_strided_slice %7 {offsets = [16, 0], sizes = [8, 32], strides = [1, 1]} : vector<32x32xf32> to vector<8x32xf32>
    %cst_33 = arith.constant dense<0.000000e+00> : vector<64x32xf32>
    %76 = tpu.matmul %74, %75, %cst_33 {dimension_numbers = #tpu.dot_dimension_numbers<[1], [0], [0], [1], [0, 0, 1, 1], [], []>} : vector<64x8xf32>, vector<8x32xf32>, vector<64x32xf32> -> vector<64x32xf32>
    %77 = arith.addf %54, %76 : vector<64x32xf32>
    %78 = vector.extract_strided_slice %6 {offsets = [0, 24], sizes = [64, 8], strides = [1, 1]} : vector<64x96xf32> to vector<64x8xf32>
    %79 = vector.extract_strided_slice %6 {offsets = [0, 56], sizes = [64, 8], strides = [1, 1]} : vector<64x96xf32> to vector<64x8xf32>
    %80 = vector.extract_strided_slice %6 {offsets = [0, 88], sizes = [64, 8], strides = [1, 1]} : vector<64x96xf32> to vector<64x8xf32>
    %cst_34 = arith.constant dense<0.000000e+00> : vector<64x64xf32>
    %81 = tpu.matmul %78, %79, %cst_34 {dimension_numbers = #tpu.dot_dimension_numbers<[1], [1], [0], [0], [0, 0, 1, 0], [], []>} : vector<64x8xf32>, vector<64x8xf32>, vector<64x64xf32> -> vector<64x64xf32>
    %cst_35 = arith.constant 0.353553385 : f32
    %82 = vector.broadcast %cst_35 : f32 to vector<64x64xf32>
    %83 = arith.mulf %81, %82 : vector<64x64xf32>
    %c3 = arith.constant 3 : index
    %c0_36 = arith.constant 0 : index
    %c0_37 = arith.constant 0 : index
    %84 = vector.load %arg4[%c3, %c0_36, %c0_37] : memref<4x64x64xf32, #tpu.memory_space<vmem>>, vector<1x64x64xf32>
    %85 = vector.shape_cast %84 : vector<1x64x64xf32> to vector<64x64xf32>
    %86 = arith.addf %83, %85 : vector<64x64xf32>
    %cst_38 = arith.constant dense<0xFF800000> : vector<64xf32>
    %87 = vector.multi_reduction <maximumf>, %86, %cst_38 [1] : vector<64x64xf32> to vector<64xf32>
    %88 = vector.shape_cast %87 : vector<64xf32> to vector<64x1xf32>
    %89 = vector.broadcast %88 : vector<64x1xf32> to vector<64x64xf32>
    %90 = arith.subf %86, %89 : vector<64x64xf32>
    %91 = math.exp %90 : vector<64x64xf32>
    %cst_39 = arith.constant dense<0.000000e+00> : vector<64xf32>
    %92 = vector.multi_reduction <add>, %91, %cst_39 [1] : vector<64x64xf32> to vector<64xf32>
    %93 = vector.shape_cast %92 : vector<64xf32> to vector<64x1xf32>
    %94 = tpu.reciprocal %93 {approx = true} : vector<64x1xf32> -> vector<64x1xf32>
    %cst_40 = arith.constant dense<0.000000e+00> : vector<64x8xf32>
    %95 = tpu.matmul %91, %80, %cst_40 {dimension_numbers = #tpu.dot_dimension_numbers<[1], [0], [0], [1], [0, 0, 1, 1], [], []>} : vector<64x64xf32>, vector<64x8xf32>, vector<64x8xf32> -> vector<64x8xf32>
    %96 = vector.broadcast %94 : vector<64x1xf32> to vector<64x8xf32>
    %97 = arith.mulf %95, %96 : vector<64x8xf32>
    %98 = vector.extract_strided_slice %7 {offsets = [24, 0], sizes = [8, 32], strides = [1, 1]} : vector<32x32xf32> to vector<8x32xf32>
    %cst_41 = arith.constant dense<0.000000e+00> : vector<64x32xf32>
    %99 = tpu.matmul %97, %98, %cst_41 {dimension_numbers = #tpu.dot_dimension_numbers<[1], [0], [0], [1], [0, 0, 1, 1], [], []>} : vector<64x8xf32>, vector<8x32xf32>, vector<64x32xf32> -> vector<64x32xf32>
    %100 = arith.addf %77, %99 : vector<64x32xf32>
    %c0_42 = arith.constant 0 : index
    %c0_43 = arith.constant 0 : index
    %101 = vector.load %arg6[%c0_42, %c0_43] : memref<1x32xf32, #tpu.memory_space<vmem>>, vector<1x32xf32>
    %102 = vector.broadcast %101 : vector<1x32xf32> to vector<64x32xf32>
    %103 = arith.addf %100, %102 : vector<64x32xf32>
    %c0_44 = arith.constant 0 : index
    %c0_45 = arith.constant 0 : index
    %c0_46 = arith.constant 0 : index
    %104 = vector.load %arg7[%c0_44, %c0_45, %c0_46] : memref<1x64x32xf32, #tpu.memory_space<vmem>>, vector<1x64x32xf32>
    %105 = vector.shape_cast %104 : vector<1x64x32xf32> to vector<64x32xf32>
    %106 = vector.shape_cast %103 : vector<64x32xf32> to vector<1x64x32xf32>
    tpu.vector_store %arg7[%c0_44, %c0_45, %c0_46], %106 {strides = array<i32>} : memref<1x64x32xf32, #tpu.memory_space<vmem>>, vector<1x64x32xf32>,
    return
  }
  func.func @transform_0(%arg0: i32) -> (i32, i32, i32) {
    %c0_i32 = arith.constant 0 : i32
    %c0_i32_0 = arith.constant 0 : i32
    %c0_i32_1 = arith.constant 0 : i32
    return %arg0, %c0_i32, %c0_i32_0 : i32, i32, i32
  }
  func.func @transform_1(%arg0: i32) -> (i32, i32) {
    %c0_i32 = arith.constant 0 : i32
    %c0_i32_0 = arith.constant 0 : i32
    %c0_i32_1 = arith.constant 0 : i32
    return %c0_i32, %c0_i32_0 : i32, i32
  }
  func.func @transform_2(%arg0: i32) -> (i32, i32) {
    %c0_i32 = arith.constant 0 : i32
    %c0_i32_0 = arith.constant 0 : i32
    %c0_i32_1 = arith.constant 0 : i32
    return %c0_i32, %c0_i32_0 : i32, i32
  }
  func.func @transform_3(%arg0: i32) -> (i32, i32, i32) {
    %c0_i32 = arith.constant 0 : i32
    %c0_i32_0 = arith.constant 0 : i32
    %c0_i32_1 = arith.constant 0 : i32
    %c0_i32_2 = arith.constant 0 : i32
    return %c0_i32, %c0_i32_0, %c0_i32_1 : i32, i32, i32
  }
  func.func @transform_4(%arg0: i32) -> (i32, i32) {
    %c0_i32 = arith.constant 0 : i32
    %c0_i32_0 = arith.constant 0 : i32
    %c0_i32_1 = arith.constant 0 : i32
    return %c0_i32, %c0_i32_0 : i32, i32
  }
  func.func @transform_5(%arg0: i32) -> (i32, i32) {
    %c0_i32 = arith.constant 0 : i32
    %c0_i32_0 = arith.constant 0 : i32
    %c0_i32_1 = arith.constant 0 : i32
    return %c0_i32, %c0_i32_0 : i32, i32
  }
  func.func @transform_6(%arg0: i32) -> (i32, i32, i32) {
    %c0_i32 = arith.constant 0 : i32
    %c0_i32_0 = arith.constant 0 : i32
    %c0_i32_1 = arith.constant 0 : i32
    return %arg0, %c0_i32, %c0_i32_0 : i32, i32, i32
  }
}

module attributes {stable_mosaic.version = 11 : i64} {
  func.func @_conv_merge_kernel(%arg0: i32, %arg1: memref<1x10x10x32xf32, #tpu.memory_space<vmem>>, %arg2: memref<1x64x32xf32, #tpu.memory_space<vmem>>, %arg3: memref<9x32xf32, #tpu.memory_space<vmem>>, %arg4: memref<1x32xf32, #tpu.memory_space<vmem>>, %arg5: memref<32x32xf32, #tpu.memory_space<vmem>>, %arg6: memref<1x32xf32, #tpu.memory_space<vmem>>, %arg7: memref<1x64x32xf32, #tpu.memory_space<vmem>>) attributes {dimension_semantics = [#tpu.dimension_semantics<parallel>], iteration_bounds = array<i64: 2>, scalar_prefetch = 0 : i64, scratch_operands = 0 : i64, tpu.core_type = #tpu.core_type<tc>, window_params = [{transform_indices = @transform_0, window_bounds = array<i64: 1, 10, 10, 32>}, {transform_indices = @transform_1, window_bounds = array<i64: 1, 64, 32>}, {pipeline_mode = #tpu.pipeline_mode<synchronous>, transform_indices = @transform_2, window_bounds = array<i64: 9, 32>}, {pipeline_mode = #tpu.pipeline_mode<synchronous>, transform_indices = @transform_3, window_bounds = array<i64: 1, 32>}, {pipeline_mode = #tpu.pipeline_mode<synchronous>, transform_indices = @transform_4, window_bounds = array<i64: 32, 32>}, {pipeline_mode = #tpu.pipeline_mode<synchronous>, transform_indices = @transform_5, window_bounds = array<i64: 1, 32>}, {transform_indices = @transform_6, window_bounds = array<i64: 1, 64, 32>}]} {
    %c0 = arith.constant 0 : index
    %c0_0 = arith.constant 0 : index
    %c0_1 = arith.constant 0 : index
    %c0_2 = arith.constant 0 : index
    %0 = vector.load %arg1[%c0, %c0_0, %c0_1, %c0_2] : memref<1x10x10x32xf32, #tpu.memory_space<vmem>>, vector<1x10x10x32xf32>
    %1 = vector.shape_cast %0 : vector<1x10x10x32xf32> to vector<10x10x32xf32>
    %c0_3 = arith.constant 0 : index
    %c0_4 = arith.constant 0 : index
    %2 = vector.load %arg3[%c0_3, %c0_4] : memref<9x32xf32, #tpu.memory_space<vmem>>, vector<9x32xf32>
    %cst = arith.constant 0.000000e+00 : f32
    %3 = vector.broadcast %cst : f32 to vector<8x8x32xf32>
    %4 = vector.extract_strided_slice %1 {offsets = [0, 0, 0], sizes = [8, 8, 32], strides = [1, 1, 1]} : vector<10x10x32xf32> to vector<8x8x32xf32>
    %5 = vector.extract_strided_slice %2 {offsets = [0, 0], sizes = [1, 32], strides = [1, 1]} : vector<9x32xf32> to vector<1x32xf32>
    %6 = vector.shape_cast %5 : vector<1x32xf32> to vector<32xf32>
    %7 = vector.shape_cast %6 : vector<32xf32> to vector<1x1x32xf32>
    %8 = vector.broadcast %7 : vector<1x1x32xf32> to vector<8x8x32xf32>
    %9 = arith.mulf %4, %8 : vector<8x8x32xf32>
    %10 = arith.addf %3, %9 : vector<8x8x32xf32>
    %11 = vector.extract_strided_slice %1 {offsets = [0, 1, 0], sizes = [8, 8, 32], strides = [1, 1, 1]} : vector<10x10x32xf32> to vector<8x8x32xf32>
    %12 = vector.extract_strided_slice %2 {offsets = [1, 0], sizes = [1, 32], strides = [1, 1]} : vector<9x32xf32> to vector<1x32xf32>
    %13 = vector.shape_cast %12 : vector<1x32xf32> to vector<32xf32>
    %14 = vector.shape_cast %13 : vector<32xf32> to vector<1x1x32xf32>
    %15 = vector.broadcast %14 : vector<1x1x32xf32> to vector<8x8x32xf32>
    %16 = arith.mulf %11, %15 : vector<8x8x32xf32>
    %17 = arith.addf %10, %16 : vector<8x8x32xf32>
    %18 = vector.extract_strided_slice %1 {offsets = [0, 2, 0], sizes = [8, 8, 32], strides = [1, 1, 1]} : vector<10x10x32xf32> to vector<8x8x32xf32>
    %19 = vector.extract_strided_slice %2 {offsets = [2, 0], sizes = [1, 32], strides = [1, 1]} : vector<9x32xf32> to vector<1x32xf32>
    %20 = vector.shape_cast %19 : vector<1x32xf32> to vector<32xf32>
    %21 = vector.shape_cast %20 : vector<32xf32> to vector<1x1x32xf32>
    %22 = vector.broadcast %21 : vector<1x1x32xf32> to vector<8x8x32xf32>
    %23 = arith.mulf %18, %22 : vector<8x8x32xf32>
    %24 = arith.addf %17, %23 : vector<8x8x32xf32>
    %25 = vector.extract_strided_slice %1 {offsets = [1, 0, 0], sizes = [8, 8, 32], strides = [1, 1, 1]} : vector<10x10x32xf32> to vector<8x8x32xf32>
    %26 = vector.extract_strided_slice %2 {offsets = [3, 0], sizes = [1, 32], strides = [1, 1]} : vector<9x32xf32> to vector<1x32xf32>
    %27 = vector.shape_cast %26 : vector<1x32xf32> to vector<32xf32>
    %28 = vector.shape_cast %27 : vector<32xf32> to vector<1x1x32xf32>
    %29 = vector.broadcast %28 : vector<1x1x32xf32> to vector<8x8x32xf32>
    %30 = arith.mulf %25, %29 : vector<8x8x32xf32>
    %31 = arith.addf %24, %30 : vector<8x8x32xf32>
    %32 = vector.extract_strided_slice %1 {offsets = [1, 1, 0], sizes = [8, 8, 32], strides = [1, 1, 1]} : vector<10x10x32xf32> to vector<8x8x32xf32>
    %33 = vector.extract_strided_slice %2 {offsets = [4, 0], sizes = [1, 32], strides = [1, 1]} : vector<9x32xf32> to vector<1x32xf32>
    %34 = vector.shape_cast %33 : vector<1x32xf32> to vector<32xf32>
    %35 = vector.shape_cast %34 : vector<32xf32> to vector<1x1x32xf32>
    %36 = vector.broadcast %35 : vector<1x1x32xf32> to vector<8x8x32xf32>
    %37 = arith.mulf %32, %36 : vector<8x8x32xf32>
    %38 = arith.addf %31, %37 : vector<8x8x32xf32>
    %39 = vector.extract_strided_slice %1 {offsets = [1, 2, 0], sizes = [8, 8, 32], strides = [1, 1, 1]} : vector<10x10x32xf32> to vector<8x8x32xf32>
    %40 = vector.extract_strided_slice %2 {offsets = [5, 0], sizes = [1, 32], strides = [1, 1]} : vector<9x32xf32> to vector<1x32xf32>
    %41 = vector.shape_cast %40 : vector<1x32xf32> to vector<32xf32>
    %42 = vector.shape_cast %41 : vector<32xf32> to vector<1x1x32xf32>
    %43 = vector.broadcast %42 : vector<1x1x32xf32> to vector<8x8x32xf32>
    %44 = arith.mulf %39, %43 : vector<8x8x32xf32>
    %45 = arith.addf %38, %44 : vector<8x8x32xf32>
    %46 = vector.extract_strided_slice %1 {offsets = [2, 0, 0], sizes = [8, 8, 32], strides = [1, 1, 1]} : vector<10x10x32xf32> to vector<8x8x32xf32>
    %47 = vector.extract_strided_slice %2 {offsets = [6, 0], sizes = [1, 32], strides = [1, 1]} : vector<9x32xf32> to vector<1x32xf32>
    %48 = vector.shape_cast %47 : vector<1x32xf32> to vector<32xf32>
    %49 = vector.shape_cast %48 : vector<32xf32> to vector<1x1x32xf32>
    %50 = vector.broadcast %49 : vector<1x1x32xf32> to vector<8x8x32xf32>
    %51 = arith.mulf %46, %50 : vector<8x8x32xf32>
    %52 = arith.addf %45, %51 : vector<8x8x32xf32>
    %53 = vector.extract_strided_slice %1 {offsets = [2, 1, 0], sizes = [8, 8, 32], strides = [1, 1, 1]} : vector<10x10x32xf32> to vector<8x8x32xf32>
    %54 = vector.extract_strided_slice %2 {offsets = [7, 0], sizes = [1, 32], strides = [1, 1]} : vector<9x32xf32> to vector<1x32xf32>
    %55 = vector.shape_cast %54 : vector<1x32xf32> to vector<32xf32>
    %56 = vector.shape_cast %55 : vector<32xf32> to vector<1x1x32xf32>
    %57 = vector.broadcast %56 : vector<1x1x32xf32> to vector<8x8x32xf32>
    %58 = arith.mulf %53, %57 : vector<8x8x32xf32>
    %59 = arith.addf %52, %58 : vector<8x8x32xf32>
    %60 = vector.extract_strided_slice %1 {offsets = [2, 2, 0], sizes = [8, 8, 32], strides = [1, 1, 1]} : vector<10x10x32xf32> to vector<8x8x32xf32>
    %61 = vector.extract_strided_slice %2 {offsets = [8, 0], sizes = [1, 32], strides = [1, 1]} : vector<9x32xf32> to vector<1x32xf32>
    %62 = vector.shape_cast %61 : vector<1x32xf32> to vector<32xf32>
    %63 = vector.shape_cast %62 : vector<32xf32> to vector<1x1x32xf32>
    %64 = vector.broadcast %63 : vector<1x1x32xf32> to vector<8x8x32xf32>
    %65 = arith.mulf %60, %64 : vector<8x8x32xf32>
    %66 = arith.addf %59, %65 : vector<8x8x32xf32>
    %c0_5 = arith.constant 0 : index
    %c0_6 = arith.constant 0 : index
    %67 = vector.load %arg4[%c0_5, %c0_6] : memref<1x32xf32, #tpu.memory_space<vmem>>, vector<1x32xf32>
    %68 = vector.shape_cast %67 : vector<1x32xf32> to vector<1x1x32xf32>
    %69 = vector.broadcast %68 : vector<1x1x32xf32> to vector<8x8x32xf32>
    %70 = arith.addf %66, %69 : vector<8x8x32xf32>
    %71 = vector.shape_cast %70 : vector<8x8x32xf32> to vector<64x32xf32>
    %c0_7 = arith.constant 0 : index
    %c0_8 = arith.constant 0 : index
    %c0_9 = arith.constant 0 : index
    %72 = vector.load %arg2[%c0_7, %c0_8, %c0_9] : memref<1x64x32xf32, #tpu.memory_space<vmem>>, vector<1x64x32xf32>
    %73 = vector.shape_cast %72 : vector<1x64x32xf32> to vector<64x32xf32>
    %74 = arith.addf %71, %73 : vector<64x32xf32>
    %c0_10 = arith.constant 0 : index
    %c0_11 = arith.constant 0 : index
    %75 = vector.load %arg5[%c0_10, %c0_11] : memref<32x32xf32, #tpu.memory_space<vmem>>, vector<32x32xf32>
    %cst_12 = arith.constant dense<0.000000e+00> : vector<64x32xf32>
    %76 = tpu.matmul %74, %75, %cst_12 {dimension_numbers = #tpu.dot_dimension_numbers<[1], [0], [0], [1], [0, 0, 1, 1], [], []>} : vector<64x32xf32>, vector<32x32xf32>, vector<64x32xf32> -> vector<64x32xf32>
    %c0_13 = arith.constant 0 : index
    %c0_14 = arith.constant 0 : index
    %77 = vector.load %arg6[%c0_13, %c0_14] : memref<1x32xf32, #tpu.memory_space<vmem>>, vector<1x32xf32>
    %78 = vector.broadcast %77 : vector<1x32xf32> to vector<64x32xf32>
    %79 = arith.addf %76, %78 : vector<64x32xf32>
    %c0_15 = arith.constant 0 : index
    %c0_16 = arith.constant 0 : index
    %c0_17 = arith.constant 0 : index
    %80 = vector.load %arg7[%c0_15, %c0_16, %c0_17] : memref<1x64x32xf32, #tpu.memory_space<vmem>>, vector<1x64x32xf32>
    %81 = vector.shape_cast %80 : vector<1x64x32xf32> to vector<64x32xf32>
    %82 = vector.shape_cast %79 : vector<64x32xf32> to vector<1x64x32xf32>
    tpu.vector_store %arg7[%c0_15, %c0_16, %c0_17], %82 {strides = array<i32>} : memref<1x64x32xf32, #tpu.memory_space<vmem>>, vector<1x64x32xf32>,
    return
  }
  func.func @transform_0(%arg0: i32) -> (i32, i32, i32, i32) {
    %c0_i32 = arith.constant 0 : i32
    %c0_i32_0 = arith.constant 0 : i32
    %c0_i32_1 = arith.constant 0 : i32
    %c0_i32_2 = arith.constant 0 : i32
    return %arg0, %c0_i32, %c0_i32_0, %c0_i32_1 : i32, i32, i32, i32
  }
  func.func @transform_1(%arg0: i32) -> (i32, i32, i32) {
    %c0_i32 = arith.constant 0 : i32
    %c0_i32_0 = arith.constant 0 : i32
    %c0_i32_1 = arith.constant 0 : i32
    return %arg0, %c0_i32, %c0_i32_0 : i32, i32, i32
  }
  func.func @transform_2(%arg0: i32) -> (i32, i32) {
    %c0_i32 = arith.constant 0 : i32
    %c0_i32_0 = arith.constant 0 : i32
    %c0_i32_1 = arith.constant 0 : i32
    return %c0_i32, %c0_i32_0 : i32, i32
  }
  func.func @transform_3(%arg0: i32) -> (i32, i32) {
    %c0_i32 = arith.constant 0 : i32
    %c0_i32_0 = arith.constant 0 : i32
    %c0_i32_1 = arith.constant 0 : i32
    return %c0_i32, %c0_i32_0 : i32, i32
  }
  func.func @transform_4(%arg0: i32) -> (i32, i32) {
    %c0_i32 = arith.constant 0 : i32
    %c0_i32_0 = arith.constant 0 : i32
    %c0_i32_1 = arith.constant 0 : i32
    return %c0_i32, %c0_i32_0 : i32, i32
  }
  func.func @transform_5(%arg0: i32) -> (i32, i32) {
    %c0_i32 = arith.constant 0 : i32
    %c0_i32_0 = arith.constant 0 : i32
    %c0_i32_1 = arith.constant 0 : i32
    return %c0_i32, %c0_i32_0 : i32, i32
  }
  func.func @transform_6(%arg0: i32) -> (i32, i32, i32) {
    %c0_i32 = arith.constant 0 : i32
    %c0_i32_0 = arith.constant 0 : i32
    %c0_i32_1 = arith.constant 0 : i32
    return %arg0, %c0_i32, %c0_i32_0 : i32, i32, i32
  }
}

</mosaic_0001>

<bundles_post_ra>
// kernel: convnat_forward.5
= control target key start
LH: loop header
LB: loop body
LE: loop exit
PB: predicated region body
PF: predicated region fallthrough
CT: control target
= control target key end

     0   :  { %s1180_s21 = smov 0   ;;  %s1632_s0 = inlined_call_operand.vmem [shape: f32[2,10,10,32], index: 0, kind: input, shape index: {}]   ;;  %s1633_s1 = inlined_call_operand.vmem [shape: f32[2,64,32], index: 1, kind: input, shape index: {}]   ;;  %s1634_s2 = inlined_call_operand.vmem [shape: f32[9,32], index: 2, kind: input, shape index: {}]   ;;  %s1635_s3 = inlined_call_operand.vmem [shape: f32[1,32], index: 3, kind: input, shape index: {}]   ;;  %s1636_s4 = inlined_call_operand.vmem [shape: f32[32,32], index: 4, kind: input, shape index: {}]   ;;  %s1637_s5 = inlined_call_operand.vmem [shape: f32[1,32], index: 5, kind: input, shape index: {}]   ;;  %s1638_s6 = inlined_call_operand.vmem [shape: f32[2,64,32], index: 6, kind: output, shape index: {}]  }
   0x1 LB: > { %s1059_s22 = sadd.s32 4294967295, %s1143_s21   ;;  %p1063_p0 = scmp.ge.s32.totalorder %s1143_s21, 1  ;;  %s1143_s21 = sphi %s1180_s21, %s16_s21  }
   0x2   : > { %p222_p1 = scmp.lt.s32.totalorder %s1143_s21, 3 }
   0x4   : > { %p223_p2 = pnand %p1063_p0, %p222_p1 }
   0x5   : > { %v843_v0 = vld [vmem:[%s1636_s4] sm:$0xff] (!%p223_p2)  ;;  %v844_v1 = vld [vmem:[%s1636_s4 + $0x8] sm:$0xff] (!%p223_p2)  ;;  %v845_v2 = vld [vmem:[%s1636_s4 + $0x10] sm:$0xff] (!%p223_p2)  ;;  %p257_p3 = scmp.lt.s32.totalorder (!%p223_p2), %s1059_s22, 1  ;;  %v294_v3 = vlaneseq (!%p223_p2)  ;;  %vm350_vm0 = vcmask (!%p223_p2), 1046528   ;;  %vm427_vm1 = vcmask (!%p223_p2), 1045504  }
   0x6   : > { %226 = sbr.rel (%p223_p2) target bundleno = 332 (0x14c), region = 44  ;;  %v1116_v4 = vpack.c.bf16 (!%p223_p2), %v844_v1, %v843_v0  ;;  %v846_v5 = vld [vmem:[%s1636_s4 + $0x18] sm:$0xff] (!%p223_p2)  ;;  %v292_v8 = vld [vmem:[%s1634_s2] sm:$0xff] (!%p223_p2)  ;;  %v1266_v50 = vld [vmem:[%s1634_s2 + $0x8] ss:$0 sm:$0xff] (!%p223_p2)  ;;  %vm854_vm2 = vcmask (!%p223_p2), 261120  }
   0x7   : > { %v1120_v6 = vpack.c.bf16 (!%p223_p2), %v846_v5, %v845_v2  ;;  %v295_v7 = vshrl.u32 (!%p223_p2), %v294_v3, 7 }
   0x8   : > { %1117 = vmatprep.subr.bf16.mxu0 (!%p223_p2), %v1116_v4  ;;  %1124 = vmatprep.subr.bf16.mxu1 (!%p223_p2), %v1116_v4 }
   0x9   : > { %1119 = vmatpush3.bf16.msra.mxu0 (!%p223_p2), %v1116_v4  ;;  %1126 = vmatpush3.bf16.msra.mxu1 (!%p223_p2), %v1116_v4  ;;  %v296_v9 = vsub.s32 (!%p223_p2), 0, %v295_v7  ;;  %v316_v10 = vsub.s32 (!%p223_p2), 1, %v295_v7  ;;  %v393_v11 = vsub.s32 (!%p223_p2), 2, %v295_v7  ;;  %v470_v12 = vsub.s32 (!%p223_p2), 3, %v295_v7 }
   0xa   : > { %1121 = vmatprep.subr.bf16.mxu0 (!%p223_p2), %v1120_v6  ;;  %1125 = vmatprep.subr.bf16.mxu1 (!%p223_p2), %v1120_v6  ;;  %v490_v13 = vsub.s32 (!%p223_p2), 4, %v295_v7  ;;  %v566_v14 = vsub.s32 (!%p223_p2), 5, %v295_v7  ;;  %v642_v15 = vsub.s32 (!%p223_p2), 6, %v295_v7  ;;  %v662_v16 = vsub.s32 (!%p223_p2), 7, %v295_v7 }
   0xb   : > { %v1211_v17 = vrot.slane (!%p223_p2), %v292_v8, %v296_v9  ;;  %v1213_v18 = vrot.slane (!%p223_p2), %v292_v8, %v316_v10  ;;  %v1215_v19 = vrot.slane (!%p223_p2), %v292_v8, %v393_v11  ;;  %v1217_v20 = vrot.slane (!%p223_p2), %v292_v8, %v470_v12 }
   0xc   : > { %v1221_v23 = vrot.slane (!%p223_p2), %v292_v8, %v490_v13  ;;  %v1223_v24 = vrot.slane (!%p223_p2), %v292_v8, %v566_v14  ;;  %v1225_v25 = vrot.slane (!%p223_p2), %v292_v8, %v642_v15  ;;  %v1227_v26 = vrot.slane (!%p223_p2), %v292_v8, %v662_v16 }
   0xd   : > { %s1640_s22 = smov (!%p257_p3, %s1059_s22), 1  ;;  %1123 = vmatpush3.bf16.msra.mxu0 %v1120_v6  ;;  %1127 = vmatpush3.bf16.msra.mxu1 %v1120_v6 }
   0xe   : > { %s1128_s9 = smul.u32 160, %s1640_s22  ;;  %s1082_s15 = sshll.u32 %s1640_s22, 6 }
   0xf   : > { %s1339_s18 = scalar_lea.vmem %s1633_s1, %s1082_s15  ;;  %s271_s27 = scalar_lea.vmem %s1638_s6, %s1082_s15 }
  0x10   : > { %s1209_s12 = scalar_lea.vmem %s1632_s0, %s1128_s9 }
  0x11   : > { %v272_v21 = vld [vmem:[%s1209_s12] sm:$0xff]  ;;  %v273_v22 = vld [vmem:[%s1209_s12 + $0x8] sm:$0x3]  ;;  %v275_v27 = vld [vmem:[%s1209_s12 + $0x18] sm:$0x3] }
  0x12   : > { %v1231_v28 = vld [vmem:[%s1209_s12 + $0x28] sm:$0x3]  ;;  %v298_v29 = vmul.f32 %v1211_v17, %v272_v21  ;;  %v318_v30 = vmul.f32 %v1213_v18, %v272_v21  ;;  %v319_v31 = vmul.f32 %v1213_v18, %v273_v22  ;;  %v1237_v32 = vld [vmem:[%s1209_s12 + $0x10] sm:$0xff]  ;;  %v1240_v33 = vmul.f32 %v1213_v18, %v275_v27  ;;  %v1261_v49 = vld [vmem:[%s1209_s12 + $0x20] sm:$0xff] }
  0x13   : > { %v1244_v34 = vmul.f32 %v1213_v18, %v1231_v28  ;;  %v395_v35 = vmul.f32 %v1215_v19, %v272_v21  ;;  %v396_v36 = vmul.f32 %v1215_v19, %v273_v22  ;;  %v1249_v39 = vmul.f32 %v1215_v19, %v275_v27  ;;  %v1279_v63 = vld [vmem:[%s1209_s12 + $0x40] sm:$0xff]  ;;  %v1282_v0 = vld [vmem:[%s1209_s12 + $0x48] sm:$0x3] }
  0x14   : > { %v351_v37 = vrot.slane %v318_v30, 1  ;;  %v352_v38 = vrot.slane %v319_v31, 1  ;;  %v472_v40 = vmul.f32 %v1217_v20, %v1237_v32  ;;  %v355_v41 = vrot.slane %v1240_v33, 1  ;;  %v1290_v5 = vld [vmem:[%s1209_s12 + $0x68] sm:$0x3] }
  0x15   : > { %v358_v42 = vrot.slane %v1244_v34, 1  ;;  %v428_v43 = vrot.slane %v395_v35, 2  ;;  %v429_v44 = vrot.slane %v396_v36, 2  ;;  %v432_v46 = vrot.slane %v1249_v39, 2  ;;  %v1313_v36 = vld [vmem:[%s1209_s12 + $0x58] sm:$0x3] }
  0x16   : > { %v353_v45 = vsel %vm350_vm0, %v351_v37, %v352_v38  ;;  %v492_v47 = vmul.f32 %v1221_v23, %v1237_v32  ;;  %v493_v48 = vmul.f32 %v1221_v23, %v275_v27  ;;  %v568_v53 = vmul.f32 %v1223_v24, %v1237_v32 }
  0x17   : > { %v383_v51 = vadd.f32 %v353_v45, %v298_v29  ;;  %v430_v52 = vsel %vm427_vm1, %v428_v43, %v429_v44  ;;  %v569_v54 = vmul.f32 %v1223_v24, %v275_v27  ;;  %v644_v57 = vmul.f32 %v1225_v25, %v1261_v49  ;;  %v1308_v27 = vld [vmem:[%s1209_s12 + $0x50] sm:$0xff] }
  0x18   : > { %v524_v55 = vrot.slane %v492_v47, 1  ;;  %v525_v56 = vrot.slane %v493_v48, 1  ;;  %v664_v58 = vmul.f32 %v1227_v26, %v1261_v49  ;;  %v600_v60 = vrot.slane %v568_v53, 2 }
  0x19   : > { %v460_v59 = vadd.f32 %v430_v52, %v383_v51  ;;  %v601_v61 = vrot.slane %v569_v54, 2  ;;  %v665_v62 = vmul.f32 %v1227_v26, %v1231_v28  ;;  %v740_v3 = vmul.f32 %v1266_v50, %v1261_v49  ;;  %v1325_v51 = vld [vmem:[%s1209_s12 + $0x60] sm:$0xff] }
  0x1a   : > { %v526_v1 = vsel %vm350_vm0, %v524_v55, %v525_v56  ;;  %v696_v2 = vrot.slane %v664_v58, 1  ;;  %v741_v4 = vmul.f32 %v1266_v50, %v1231_v28  ;;  %v302_v9 = vmul.f32 %v1211_v17, %v1279_v63 }
  0x1b   : > { %v480_v6 = vadd.f32 %v472_v40, %v460_v59  ;;  %v602_v7 = vsel %vm427_vm1, %v600_v60, %v601_v61  ;;  %v697_v8 = vrot.slane %v665_v62, 1  ;;  %v772_v10 = vrot.slane %v740_v3, 2 }
  0x1c   : > { %v773_v11 = vrot.slane %v741_v4, 2  ;;  %v326_v12 = vmul.f32 %v1213_v18, %v1279_v63  ;;  %v327_v13 = vmul.f32 %v1213_v18, %v1282_v0  ;;  %v1302_v16 = vmul.f32 %v1213_v18, %v1290_v5 }
  0x1d   : > { %v556_v14 = vadd.f32 %v526_v1, %v480_v6  ;;  %v698_v15 = vsel %vm350_vm0, %v696_v2, %v697_v8  ;;  %v403_v21 = vmul.f32 %v1215_v19, %v1279_v63  ;;  %v404_v31 = vmul.f32 %v1215_v19, %v1282_v0  ;;  %v1344_v1 = vld [vmem:[%s1635_s3] ss:$0 sm:$0xff] }
  0x1e   : > { %v774_v22 = vsel %vm427_vm1, %v772_v10, %v773_v11  ;;  %v363_v29 = vrot.slane %v326_v12, 1  ;;  %v364_v30 = vrot.slane %v327_v13, 1  ;;  %v370_v37 = vrot.slane %v1302_v16, 1  ;;  %v827_v11 = vld [vmem:[%s1339_s18] sm:$0xff] }
  0x1f   : > { %v632_v35 = vadd.f32 %v602_v7, %v556_v14  ;;  %v440_v38 = vrot.slane %v403_v21, 2  ;;  %v476_v40 = vmul.f32 %v1217_v20, %v1308_v27  ;;  %v441_v44 = vrot.slane %v404_v31, 2 }
  0x20   : > { %v365_v43 = vsel %vm350_vm0, %v363_v29, %v364_v30  ;;  %v500_v45 = vmul.f32 %v1221_v23, %v1308_v27  ;;  %v501_v47 = vmul.f32 %v1221_v23, %v1313_v36  ;;  %v576_v53 = vmul.f32 %v1223_v24, %v1308_v27 }
  0x21   : > { %v652_v48 = vadd.f32 %v644_v57, %v632_v35  ;;  %v387_v52 = vadd.f32 %v365_v43, %v302_v9  ;;  %v577_v54 = vmul.f32 %v1223_v24, %v1313_v36  ;;  %v442_v55 = vsel %vm427_vm1, %v440_v38, %v441_v44 }
  0x22   : > { %v536_v56 = vrot.slane %v500_v45, 1  ;;  %v537_v58 = vrot.slane %v501_v47, 1  ;;  %v648_v59 = vmul.f32 %v1225_v25, %v1325_v51  ;;  %v612_v61 = vrot.slane %v576_v53, 2 }
  0x23   : > { %v728_v57 = vadd.f32 %v698_v15, %v652_v48  ;;  %v464_v60 = vadd.f32 %v442_v55, %v387_v52  ;;  %v613_v62 = vrot.slane %v577_v54, 2  ;;  %v672_v3 = vmul.f32 %v1227_v26, %v1325_v51  ;;  %v1371_v48 = vld [vmem:[%s1209_s12 + $0x30] sm:$0xff] }
  0x24   : > { %v538_v2 = vsel %vm350_vm0, %v536_v56, %v537_v58  ;;  %v673_v4 = vmul.f32 %v1227_v26, %v1290_v5  ;;  %v748_v6 = vmul.f32 %v1266_v50, %v1325_v51  ;;  %v749_v10 = vmul.f32 %v1266_v50, %v1290_v5 }
  0x25   : > { %v804_v7 = vadd.f32 %v774_v22, %v728_v57  ;;  %v484_v8 = vadd.f32 %v476_v40, %v464_v60  ;;  %v614_v9 = vsel %vm427_vm1, %v612_v61, %v613_v62  ;;  %v708_v12 = vrot.slane %v672_v3, 1  ;;  %v1386_v60 = vld [vmem:[%s1209_s12 + $0x38] sm:$0x3] }
  0x26   : > { %v709_v13 = vrot.slane %v673_v4, 1  ;;  %v784_v14 = vrot.slane %v748_v6, 2  ;;  %v299_v15 = vmul.f32 %v1211_v17, %v1237_v32  ;;  %v785_v30 = vrot.slane %v749_v10, 2 }
  0x27   : > { %v819_v21 = vadd.f32 %v1344_v1, %v804_v7  ;;  %v560_v29 = vadd.f32 %v538_v2, %v484_v8  ;;  %v320_v22 = vmul.f32 %v1213_v18, %v1237_v32  ;;  %v397_v35 = vmul.f32 %v1215_v19, %v1237_v32 }
  0x28   : > { %v710_v31 = vsel %vm350_vm0, %v708_v12, %v709_v13  ;;  %v473_v38 = vmul.f32 %v1217_v20, %v1261_v49  ;;  %v494_v40 = vmul.f32 %v1221_v23, %v1261_v49  ;;  %v786_v45 = vsel %vm427_vm1, %v784_v14, %v785_v30  ;;  %v831_v12 = vld [vmem:[%s1339_s18 + $0x20] sm:$0xff] }
  0x29   : > { %v835_v43 = vadd.f32 %v827_v11, %v819_v21  ;;  %v636_v44 = vadd.f32 %v614_v9, %v560_v29  ;;  %v354_v47 = vrot.slane %v320_v22, 1  ;;  %v431_v52 = vrot.slane %v397_v35, 2 }
  0x2a   : > { %v495_v53 = vmul.f32 %v1221_v23, %v1231_v28  ;;  %v527_v54 = vrot.slane %v494_v40, 1  ;;  %v570_v32 = vmul.f32 %v1223_v24, %v1261_v49  ;;  %v571_v58 = vmul.f32 %v1223_v24, %v1231_v28 }
  0x2b   : > { %1104 = vmatprep.mubr.msk.f32.mxu0 %vm854_vm2, %v835_v43  ;;  %v656_v55 = vadd.f32 %v648_v59, %v636_v44  ;;  %v356_v56 = vsel %vm350_vm0, %v354_v47, %v355_v41  ;;  %v645_v57 = vmul.f32 %v1225_v25, %v1371_v48  ;;  %v433_v62 = vsel %vm427_vm1, %v431_v52, %v432_v46 }
  0x2c   : > { %v384_v61 = vadd.f32 %v356_v56, %v299_v15  ;;  %v528_v2 = vrot.slane %v495_v53, 1  ;;  %v603_v59 = vrot.slane %v570_v32, 2  ;;  %v604_v33 = vrot.slane %v571_v58, 2 }
  0x2d   : > { %v732_v3 = vadd.f32 %v710_v31, %v656_v55  ;;  %v666_v41 = vmul.f32 %v1227_v26, %v1371_v48  ;;  %v667_v4 = vmul.f32 %v1227_v26, %v1386_v60  ;;  %v742_v8 = vmul.f32 %v1266_v50, %v1371_v48 }
  0x2e   : > { %v461_v6 = vadd.f32 %v433_v62, %v384_v61  ;;  %v529_v7 = vsel %vm350_vm0, %v527_v54, %v528_v2  ;;  %v743_v39 = vmul.f32 %v1266_v50, %v1386_v60  ;;  %v605_v9 = vsel %vm427_vm1, %v603_v59, %v604_v33  ;;  %v1428_v59 = vld [vmem:[%s1209_s12 + $0x70] sm:$0xff] }
  0x2f   : > { %v808_v46 = vadd.f32 %v786_v45, %v732_v3  ;;  %v699_v10 = vrot.slane %v666_v41, 1  ;;  %v700_v11 = vrot.slane %v667_v4, 1  ;;  %v775_v14 = vrot.slane %v742_v8, 2  ;;  %v1432_v4 = vld [vmem:[%s1209_s12 + $0x78] sm:$0x3] }
  0x30   : > { %v481_v13 = vadd.f32 %v473_v38, %v461_v6  ;;  %v776_v15 = vrot.slane %v743_v39, 2  ;;  %v303_v21 = vmul.f32 %v1211_v17, %v1308_v27  ;;  %v328_v22 = vmul.f32 %v1213_v18, %v1308_v27 }
  0x31   : > { %v823_v29 = vadd.f32 %v1344_v1, %v808_v46  ;;  %v701_v30 = vsel %vm350_vm0, %v699_v10, %v700_v11  ;;  %v329_v31 = vmul.f32 %v1213_v18, %v1313_v36  ;;  %v405_v38 = vmul.f32 %v1215_v19, %v1308_v27 }
  0x32   : > { %v557_v35 = vadd.f32 %v529_v7, %v481_v13  ;;  %v777_v40 = vsel %vm427_vm1, %v775_v14, %v776_v15  ;;  %v406_v43 = vmul.f32 %v1215_v19, %v1313_v36  ;;  %v366_v45 = vrot.slane %v328_v22, 1  ;;  %v828_v22 = vld [vmem:[%s1339_s18 + $0x8] sm:$0xff] }
  0x33   : > { %v839_v44 = vadd.f32 %v831_v12, %v823_v29  ;;  %v367_v47 = vrot.slane %v329_v31, 1  ;;  %v477_v52 = vmul.f32 %v1217_v20, %v1325_v51  ;;  %v443_v54 = vrot.slane %v405_v38, 2 }
  0x34   : > { %v633_v53 = vadd.f32 %v605_v9, %v557_v35  ;;  %v444_v32 = vrot.slane %v406_v43, 2  ;;  %v502_v55 = vmul.f32 %v1221_v23, %v1325_v51  ;;  %v503_v58 = vmul.f32 %v1221_v23, %v1290_v5 }
  0x35   : > { %1110 = vmatprep.mubr.msk.f32.mxu1 %vm854_vm2, %v839_v44  ;;  %v368_v56 = vsel %vm350_vm0, %v366_v45, %v367_v47  ;;  %v578_v61 = vmul.f32 %v1223_v24, %v1325_v51  ;;  %v579_v62 = vmul.f32 %v1223_v24, %v1290_v5  ;;  %v649_v39 = vmul.f32 %v1225_v25, %v1428_v59 }
  0x36   : > { %v653_v2 = vadd.f32 %v645_v57, %v633_v53  ;;  %v388_v3 = vadd.f32 %v368_v56, %v303_v21  ;;  %v445_v33 = vsel %vm427_vm1, %v443_v54, %v444_v32  ;;  %v539_v41 = vrot.slane %v502_v55, 1 }
  0x37   : > { %v540_v6 = vrot.slane %v503_v58, 1  ;;  %v615_v7 = vrot.slane %v578_v61, 2  ;;  %v616_v8 = vrot.slane %v579_v62, 2  ;;  %v674_v57 = vmul.f32 %v1227_v26, %v1428_v59 }
  0x38   : > { %v729_v46 = vadd.f32 %v701_v30, %v653_v2  ;;  %v465_v9 = vadd.f32 %v445_v33, %v388_v3  ;;  %v675_v10 = vmul.f32 %v1227_v26, %v1432_v4  ;;  %v750_v13 = vmul.f32 %v1266_v50, %v1428_v59 }
  0x39   : > { %v541_v11 = vsel %vm350_vm0, %v539_v41, %v540_v6  ;;  %v617_v12 = vsel %vm427_vm1, %v615_v7, %v616_v8  ;;  %v751_v14 = vmul.f32 %v1266_v50, %v1432_v4  ;;  %v711_v29 = vrot.slane %v674_v57, 1 }
  0x3a   : > { %v805_v15 = vadd.f32 %v777_v40, %v729_v46  ;;  %v485_v21 = vadd.f32 %v477_v52, %v465_v9  ;;  %v712_v30 = vrot.slane %v675_v10, 1  ;;  %v787_v31 = vrot.slane %v750_v13, 2 }
  0x3b   : > { %v788_v35 = vrot.slane %v751_v14, 2  ;;  %v300_v38 = vmul.f32 %v1211_v17, %v1261_v49  ;;  %v322_v43 = vmul.f32 %v1213_v18, %v1261_v49  ;;  %v399_v40 = vmul.f32 %v1215_v19, %v1261_v49 }
  0x3c   : > { %v820_v44 = vadd.f32 %v1344_v1, %v805_v15  ;;  %v561_v45 = vadd.f32 %v541_v11, %v485_v21  ;;  %v713_v47 = vsel %vm350_vm0, %v711_v29, %v712_v30  ;;  %v400_v54 = vmul.f32 %v1215_v19, %v1231_v28  ;;  %v832_v30 = vld [vmem:[%s1339_s18 + $0x28] sm:$0xff] }
  0x3d   : > { %v789_v52 = vsel %vm427_vm1, %v787_v31, %v788_v35  ;;  %v357_v53 = vrot.slane %v322_v43, 1  ;;  %v474_v32 = vmul.f32 %v1217_v20, %v1371_v48  ;;  %v434_v58 = vrot.slane %v399_v40, 2 }
  0x3e   : > { %v836_v55 = vadd.f32 %v828_v22, %v820_v44  ;;  %v637_v56 = vadd.f32 %v617_v12, %v561_v45  ;;  %v496_v61 = vmul.f32 %v1221_v23, %v1371_v48  ;;  %v435_v49 = vrot.slane %v400_v54, 2 }
  0x3f   : > { %v359_v62 = vsel %vm350_vm0, %v357_v53, %v358_v42  ;;  %v497_v2 = vmul.f32 %v1221_v23, %v1386_v60  ;;  %v572_v28 = vmul.f32 %v1223_v24, %v1371_v48  ;;  %v573_v6 = vmul.f32 %v1223_v24, %v1386_v60 }
  0x40   : > { %1105 = vmatmul.mubr.msk.f32.vlgmr.msra.gmra.mrb[0].mxu0 %vm854_vm2, %v836_v55  ;;  %v657_v3 = vadd.f32 %v649_v39, %v637_v56  ;;  %v385_v33 = vadd.f32 %v359_v62, %v300_v38  ;;  %v530_v41 = vrot.slane %v496_v61, 1  ;;  %v436_v7 = vsel %vm427_vm1, %v434_v58, %v435_v49  ;;  %v1500_v61 = vld [vmem:[%s1209_s12 + $0x80] sm:$0xff] }
  0x41   : > { %v531_v34 = vrot.slane %v497_v2, 1  ;;  %v606_v42 = vrot.slane %v572_v28, 2  ;;  %v646_v8 = vmul.f32 %v1225_v25, %v1279_v63  ;;  %v607_v57 = vrot.slane %v573_v6, 2 }
  0x42   : > { %v733_v46 = vadd.f32 %v713_v47, %v657_v3  ;;  %v462_v9 = vadd.f32 %v436_v7, %v385_v33  ;;  %v668_v10 = vmul.f32 %v1227_v26, %v1279_v63  ;;  %v669_v11 = vmul.f32 %v1227_v26, %v1282_v0 }
  0x43   : > { %v532_v39 = vsel %vm350_vm0, %v530_v41, %v531_v34  ;;  %v744_v12 = vmul.f32 %v1266_v50, %v1279_v63  ;;  %v745_v13 = vmul.f32 %v1266_v50, %v1282_v0  ;;  %v608_v21 = vsel %vm427_vm1, %v606_v42, %v607_v57 }
  0x44   : > { %v809_v14 = vadd.f32 %v789_v52, %v733_v46  ;;  %v482_v15 = vadd.f32 %v474_v32, %v462_v9  ;;  %v702_v29 = vrot.slane %v668_v10, 1  ;;  %v703_v22 = vrot.slane %v669_v11, 1  ;;  %v1518_v46 = vld [vmem:[%s1209_s12 + $0x88] sm:$0x3] }
  0x45   : > { %v778_v31 = vrot.slane %v744_v12, 2  ;;  %v779_v35 = vrot.slane %v745_v13, 2  ;;  %v304_v38 = vmul.f32 %v1211_v17, %v1325_v51  ;;  %v330_v45 = vmul.f32 %v1213_v18, %v1325_v51 }
  0x46   : > { %v824_v43 = vadd.f32 %v1344_v1, %v809_v14  ;;  %v558_v44 = vadd.f32 %v532_v39, %v482_v15  ;;  %v407_v47 = vmul.f32 %v1215_v19, %v1325_v51  ;;  %v704_v40 = vsel %vm350_vm0, %v702_v29, %v703_v22  ;;  %v829_v15 = vld [vmem:[%s1339_s18 + $0x10] sm:$0xff] }
  0x47   : > { %v780_v52 = vsel %vm427_vm1, %v778_v31, %v779_v35  ;;  %v408_v53 = vmul.f32 %v1215_v19, %v1290_v5  ;;  %v478_v54 = vmul.f32 %v1217_v20, %v1428_v59  ;;  %v369_v56 = vrot.slane %v330_v45, 1 }
  0x48   : > { %v840_v32 = vadd.f32 %v832_v30, %v824_v43  ;;  %v634_v55 = vadd.f32 %v608_v21, %v558_v44  ;;  %v446_v58 = vrot.slane %v407_v47, 2  ;;  %v504_v51 = vmul.f32 %v1221_v23, %v1428_v59 }
  0x49   : > { %v447_v62 = vrot.slane %v408_v53, 2  ;;  %v505_v49 = vmul.f32 %v1221_v23, %v1432_v4  ;;  %v580_v5 = vmul.f32 %v1223_v24, %v1428_v59  ;;  %v371_v28 = vsel %vm350_vm0, %v369_v56, %v370_v37 }
  0x4a   : > { %1111 = vmatmul.mubr.msk.f32.vlgmr.msra.gmra.mrb[0].mxu1 %vm854_vm2, %v840_v32  ;;  %v654_v2 = vadd.f32 %v646_v8, %v634_v55  ;;  %v581_v3 = vmul.f32 %v1223_v24, %v1432_v4  ;;  %v650_v33 = vmul.f32 %v1225_v25, %v1500_v61  ;;  %v389_v41 = vadd.f32 %v371_v28, %v304_v38 }
  0x4b   : > { %v448_v6 = vsel %vm427_vm1, %v446_v58, %v447_v62  ;;  %v542_v7 = vrot.slane %v504_v51, 1  ;;  %v543_v34 = vrot.slane %v505_v49, 1  ;;  %v618_v8 = vrot.slane %v580_v5, 2 }
  0x4c   : > { %v730_v42 = vadd.f32 %v704_v40, %v654_v2  ;;  %v619_v9 = vrot.slane %v581_v3, 2  ;;  %v676_v16 = vmul.f32 %v1227_v26, %v1500_v61  ;;  %v466_v37 = vadd.f32 %v448_v6, %v389_v41 }
  0x4d   : > { %v544_v57 = vsel %vm350_vm0, %v542_v7, %v543_v34  ;;  %v677_v10 = vmul.f32 %v1227_v26, %v1518_v46  ;;  %v752_v39 = vmul.f32 %v1266_v50, %v1500_v61  ;;  %v753_v14 = vmul.f32 %v1266_v50, %v1518_v46 }
  0x4e   : > { %v806_v11 = vadd.f32 %v780_v52, %v730_v42  ;;  %v620_v12 = vsel %vm427_vm1, %v618_v8, %v619_v9  ;;  %v714_v13 = vrot.slane %v676_v16, 1  ;;  %v486_v21 = vadd.f32 %v478_v54, %v466_v37 }
  0x4f   : > { %v715_v29 = vrot.slane %v677_v10, 1  ;;  %v790_v30 = vrot.slane %v752_v39, 2  ;;  %v301_v22 = vmul.f32 %v1211_v17, %v1371_v48  ;;  %v791_v35 = vrot.slane %v753_v14, 2 }
  0x50   : > { %v821_v31 = vadd.f32 %v1344_v1, %v806_v11  ;;  %v324_v38 = vmul.f32 %v1213_v18, %v1371_v48  ;;  %v325_v43 = vmul.f32 %v1213_v18, %v1386_v60  ;;  %v562_v44 = vadd.f32 %v544_v57, %v486_v21 }
  0x51   : > { %v716_v45 = vsel %vm350_vm0, %v714_v13, %v715_v29  ;;  %v401_v47 = vmul.f32 %v1215_v19, %v1371_v48  ;;  %v402_v40 = vmul.f32 %v1215_v19, %v1386_v60  ;;  %v792_v53 = vsel %vm427_vm1, %v790_v30, %v791_v35 }
  0x52   : > { %v837_v52 = vadd.f32 %v829_v15, %v821_v31  ;;  %v360_v54 = vrot.slane %v324_v38, 1  ;;  %v361_v32 = vrot.slane %v325_v43, 1  ;;  %v638_v55 = vadd.f32 %v620_v12, %v562_v44  ;;  %v833_v12 = vld [vmem:[%s1339_s18 + $0x30] sm:$0xff] }
  0x53   : > { %v437_v56 = vrot.slane %v401_v47, 2  ;;  %v438_v58 = vrot.slane %v402_v40, 2  ;;  %v475_v62 = vmul.f32 %v1217_v20, %v1279_v63  ;;  %v498_v48 = vmul.f32 %v1221_v23, %v1279_v63 }
  0x54   : > { %1107 = vmatprep.mubr.msk.f32.mxu0 %vm854_vm2, %v837_v52  ;;  %v362_v51 = vsel %vm350_vm0, %v360_v54, %v361_v32  ;;  %v499_v60 = vmul.f32 %v1221_v23, %v1282_v0  ;;  %v574_v49 = vmul.f32 %v1223_v24, %v1279_v63  ;;  %v658_v5 = vadd.f32 %v650_v33, %v638_v55  ;;  %v290_v54 = vld [vmem:[%s1209_s12 + $0x90] sm:$0xff] }
  0x55   : > { %v386_v2 = vadd.f32 %v362_v51, %v301_v22  ;;  %v439_v28 = vsel %vm427_vm1, %v437_v56, %v438_v58  ;;  %v575_v3 = vmul.f32 %v1223_v24, %v1282_v0  ;;  %v533_v41 = vrot.slane %v498_v48, 1 }
  0x56   : > { %v534_v6 = vrot.slane %v499_v60, 1  ;;  %v609_v7 = vrot.slane %v574_v49, 2  ;;  %v647_v34 = vmul.f32 %v1225_v25, %v1308_v27  ;;  %v734_v42 = vadd.f32 %v716_v45, %v658_v5 }
  0x57   : > { %v463_v8 = vadd.f32 %v439_v28, %v386_v2  ;;  %v610_v9 = vrot.slane %v575_v3, 2  ;;  %v670_v63 = vmul.f32 %v1227_v26, %v1308_v27  ;;  %v671_v16 = vmul.f32 %v1227_v26, %v1313_v36 }
  0x58   : > { %v535_v33 = vsel %vm350_vm0, %v533_v41, %v534_v6  ;;  %v746_v0 = vmul.f32 %v1266_v50, %v1308_v27  ;;  %v747_v37 = vmul.f32 %v1266_v50, %v1313_v36  ;;  %v810_v57 = vadd.f32 %v792_v53, %v734_v42  ;;  %v830_v41 = vld [vmem:[%s1339_s18 + $0x18] sm:$0xff] }
  0x59   : > { %v483_v10 = vadd.f32 %v475_v62, %v463_v8  ;;  %v611_v39 = vsel %vm427_vm1, %v609_v7, %v610_v9  ;;  %v705_v11 = vrot.slane %v670_v63, 1  ;;  %v706_v13 = vrot.slane %v671_v16, 1 }
  0x5a   : > { %v781_v14 = vrot.slane %v746_v0, 2  ;;  %v782_v15 = vrot.slane %v747_v37, 2  ;;  %v305_v21 = vmul.f32 %v1211_v17, %v1428_v59  ;;  %v825_v29 = vadd.f32 %v1344_v1, %v810_v57 }
  0x5b   : > { %v559_v30 = vadd.f32 %v535_v33, %v483_v10  ;;  %v332_v27 = vmul.f32 %v1213_v18, %v1428_v59  ;;  %v333_v36 = vmul.f32 %v1213_v18, %v1432_v4  ;;  %v707_v22 = vsel %vm350_vm0, %v705_v11, %v706_v13  ;;  %v834_v10 = vld [vmem:[%s1339_s18 + $0x38] sm:$0xff] }
  0x5c   : > { %v783_v31 = vsel %vm427_vm1, %v781_v14, %v782_v15  ;;  %v409_v35 = vmul.f32 %v1215_v19, %v1428_v59  ;;  %v410_v17 = vmul.f32 %v1215_v19, %v1432_v4  ;;  %v841_v38 = vadd.f32 %v833_v12, %v825_v29  ;;  %v291_v59 = vld [vmem:[%s1209_s12 + $0x98] sm:$0x3] }
  0x5d   : > { %v635_v43 = vadd.f32 %v611_v39, %v559_v30  ;;  %v372_v44 = vrot.slane %v332_v27, 1  ;;  %v373_v45 = vrot.slane %v333_v36, 1  ;;  %v479_v18 = vmul.f32 %v1217_v20, %v1500_v61 }
  0x5e   : > { %v449_v47 = vrot.slane %v409_v35, 2  ;;  %v450_v40 = vrot.slane %v410_v17, 2  ;;  %v506_v52 = vmul.f32 %v1221_v23, %v1500_v61  ;;  %1113 = vmatprep.mubr.msk.f32.mxu1 %vm854_vm2, %v841_v38  ;;  %v507_v19 = vmul.f32 %v1221_v23, %v1518_v46 }
  0x5f   : > { %v655_v53 = vadd.f32 %v647_v34, %v635_v43  ;;  %v374_v32 = vsel %vm350_vm0, %v372_v44, %v373_v45  ;;  %v582_v4 = vmul.f32 %v1223_v24, %v1500_v61  ;;  %v583_v58 = vmul.f32 %v1223_v24, %v1518_v46 }
  0x60   : > { %v390_v55 = vadd.f32 %v374_v32, %v305_v21  ;;  %v451_v20 = vsel %vm427_vm1, %v449_v47, %v450_v40  ;;  %v545_v56 = vrot.slane %v506_v52, 1  ;;  %v546_v51 = vrot.slane %v507_v19, 1 }
  0x61   : > { %v731_v62 = vadd.f32 %v707_v22, %v655_v53  ;;  %v621_v48 = vrot.slane %v582_v4, 2  ;;  %v622_v49 = vrot.slane %v583_v58, 2  ;;  %v678_v5 = vmul.f32 %v1227_v26, %v290_v54 }
  0x62   : > { %v467_v60 = vadd.f32 %v451_v20, %v390_v55  ;;  %v679_v23 = vmul.f32 %v1227_v26, %v291_v59  ;;  %v547_v61 = vsel %vm350_vm0, %v545_v56, %v546_v51  ;;  %v754_v28 = vmul.f32 %v1266_v50, %v290_v54 }
  0x63   : > { %v807_v2 = vadd.f32 %v783_v31, %v731_v62  ;;  %v755_v3 = vmul.f32 %v1266_v50, %v291_v59  ;;  %v623_v46 = vsel %vm427_vm1, %v621_v48, %v622_v49  ;;  %v717_v7 = vrot.slane %v678_v5, 1 }
  0x64   : > { %v487_v6 = vadd.f32 %v479_v18, %v467_v60  ;;  %v718_v34 = vrot.slane %v679_v23, 1  ;;  %v651_v8 = vmul.f32 %v1225_v25, %v290_v54  ;;  %v793_v9 = vrot.slane %v754_v28, 2  ;;  %v1071_v25 = vld [vmem:[%s1637_s5] ss:$0 sm:$0xff] }
  0x65   : > { %v822_v24 = vadd.f32 %v1344_v1, %v807_v2  ;;  %v794_v63 = vrot.slane %v755_v3, 2 }
  0x66   : > { %v563_v42 = vadd.f32 %v547_v61, %v487_v6  ;;  %v719_v50 = vsel %vm350_vm0, %v717_v7, %v718_v34 }
  0x67   : > { %v838_v26 = vadd.f32 %v830_v41, %v822_v24  ;;  %v795_v0 = vsel %vm427_vm1, %v793_v9, %v794_v63 }
  0x68   : > { %v639_v33 = vadd.f32 %v623_v46, %v563_v42 }
  0x69   : > { %1108 = vmatmul.mubr.msk.f32.gmra.mrb[2].mxu0 %vm854_vm2, %v838_v26 }
  0x6a   : > { %v659_v16 = vadd.f32 %v651_v8, %v639_v33 }
  0x6c   : > { %v735_v37 = vadd.f32 %v719_v50, %v659_v16 }
  0x6e   : > { %v811_v57 = vadd.f32 %v795_v0, %v735_v37 }
  0x70   : > { %v826_v39 = vadd.f32 %v1344_v1, %v811_v57 }
  0x72   : > { %v842_v11 = vadd.f32 %v834_v10, %v826_v39 }
  0x74   : > { %1114 = vmatmul.mubr.msk.f32.gmra.mrb[2].mxu1 %vm854_vm2, %v842_v11 }
 0x113   : > { %v1106_v12 = vpop.f32.mrb[0].mxu0 }
 0x114   : > { %v951_v13 = vadd.f32 %v1106_v12, %v1071_v25  ;;  %v945_v14 = vpop.f32.mrb[1].mxu0 }
 0x115   : > { %v946_v15 = vadd.f32 %v1071_v25, %v945_v14 }
 0x116   : > { %985 = vst.msk [vmem:[%s271_s27 + $0x8] sm:$0xff] %vm854_vm2, %v951_v13 }
 0x117   : > { %984 = vst.msk [vmem:[%s271_s27] sm:$0xff] %vm854_vm2, %v946_v15 }
 0x11d   : > { %v1112_v1 = vpop.f32.mrb[0].mxu1 }
 0x11e   : > { %v971_v21 = vadd.f32 %v1112_v1, %v1071_v25  ;;  %v965_v29 = vpop.f32.mrb[1].mxu1 }
 0x11f   : > { %v966_v30 = vadd.f32 %v1071_v25, %v965_v29 }
 0x120   : > { %989 = vst.msk [vmem:[%s271_s27 + $0x28] sm:$0xff] %vm854_vm2, %v971_v21 }
 0x121   : > { %988 = vst.msk [vmem:[%s271_s27 + $0x20] sm:$0xff] %vm854_vm2, %v966_v30 }
 0x13c   : > { %v1109_v27 = vpop.f32.mrb[2].mxu0 }
 0x13d   : > { %v961_v36 = vadd.f32 %v1109_v27, %v1071_v25  ;;  %v955_v22 = vpop.f32.mrb[3].mxu0 }
 0x13e   : > { %v956_v31 = vadd.f32 %v1071_v25, %v955_v22 }
 0x13f   : > { %987 = vst.msk [vmem:[%s271_s27 + $0x18] sm:$0xff] %vm854_vm2, %v961_v36 }
 0x140   : > { %986 = vst.msk [vmem:[%s271_s27 + $0x10] sm:$0xff] %vm854_vm2, %v956_v31 }
 0x147   : > { %v1115_v35 = vpop.f32.mrb[2].mxu1 }
 0x148   : > { %v981_v17 = vadd.f32 %v1115_v35, %v1071_v25  ;;  %v975_v38 = vpop.f32.mrb[3].mxu1 }
 0x149   : > { %v976_v43 = vadd.f32 %v1071_v25, %v975_v38 }
 0x14a   : > { %991 = vst.msk [vmem:[%s271_s27 + $0x38] sm:$0xff] %vm854_vm2, %v981_v17 }
 0x14b   : > { %990 = vst.msk [vmem:[%s271_s27 + $0x30] sm:$0xff] %vm854_vm2, %v976_v43 }
 0x14c PF: > { %s16_s21 = sadd.s32 1, %s1143_s21  }
 0x14d   : > { %p13_p4 = scmp.ge.s32.totalorder %s16_s21, 4  }
 0x14f   :  { %15 = sbr.rel (!%p13_p4) target bundleno = 1 (0x1), region = 77 }

// kernel: convnat_forward.3
= control target key start
LH: loop header
LB: loop body
LE: loop exit
PB: predicated region body
PF: predicated region fallthrough
CT: control target
= control target key end

     0   :  { %s3960_s21 = smov 0   ;;  %s4737_s0 = inlined_call_operand.vmem [shape: f32[2,64,32], index: 0, kind: input, shape index: {}]   ;;  %s4738_s1 = inlined_call_operand.vmem [shape: f32[32,96], index: 1, kind: input, shape index: {}]   ;;  %s4739_s2 = inlined_call_operand.vmem [shape: f32[1,96], index: 2, kind: input, shape index: {}]   ;;  %s4740_s3 = inlined_call_operand.vmem [shape: f32[4,64,64], index: 3, kind: input, shape index: {}]   ;;  %s4741_s4 = inlined_call_operand.vmem [shape: f32[32,32], index: 4, kind: input, shape index: {}]   ;;  %s4742_s5 = inlined_call_operand.vmem [shape: f32[1,32], index: 5, kind: input, shape index: {}]   ;;  %s4743_s6 = inlined_call_operand.vmem [shape: f32[2,64,32], index: 6, kind: output, shape index: {}]  }
   0x1 LB: > { %s2748_s22 = sadd.s32 4294967295, %s3912_s21   ;;  %p2752_p0 = scmp.ge.s32.totalorder %s3912_s21, 1  ;;  %s3912_s21 = sphi %s3960_s21, %s16_s21  }
   0x2   : > { %p212_p1 = scmp.lt.s32.totalorder %s3912_s21, 3 }
   0x4   : > { %p213_p2 = pnand %p2752_p0, %p212_p1 }
   0x5   : > { %v260_v0 = vld [vmem:[%s4738_s1] sm:$0xff] (!%p213_p2)  ;;  %v261_v1 = vld [vmem:[%s4738_s1 + $0x8] sm:$0xff] (!%p213_p2)  ;;  %v262_v2 = vld [vmem:[%s4738_s1 + $0x10] sm:$0xff] (!%p213_p2)  ;;  %p242_p3 = scmp.lt.s32.totalorder (!%p213_p2), %s2748_s22, 1  ;;  %vm271_vm0 = vcmask (!%p213_p2), 261120   ;;  %vm429_vm1 = vcmask (!%p213_p2), 64512  }
   0x6   : > { %216 = sbr.rel (%p213_p2) target bundleno = 2141 (0x85d), region = 44  ;;  %v3399_v3 = vpack.c.bf16 (!%p213_p2), %v261_v1, %v260_v0  ;;  %v263_v4 = vld [vmem:[%s4738_s1 + $0x18] sm:$0xff] (!%p213_p2)  ;;  %v2757_v14 = vld [vmem:[%s4739_s2] ss:$0 sm:$0xff] (!%p213_p2)  ;;  %s3914_s13 = smov (!%p213_p2), 96   ;;  %vm4047_vm2 = vmpackc.low (!%p213_p2), %vm429_vm1, %vm429_vm1  ;;  %vm591_vm3 = vcmask (!%p213_p2), 523264  }
   0x7   : > { %v3403_v5 = vpack.c.bf16 (!%p213_p2), %v263_v4, %v262_v2  ;;  %s3915_s14 = smov (!%p213_p2), 64   ;;  %s3916_s15 = smov (!%p213_p2), 88  }
   0x8   : > { %3400 = vmatprep.subr.bf16.mxu0 (!%p213_p2), %v3399_v3  ;;  %s3917_s30 = smov (!%p213_p2), 120   ;;  %s3918_s12 = smov (!%p213_p2), 80  }
   0x9   : > { %3402 = vmatpush3.bf16.msra.mxu0 (!%p213_p2), %v3399_v3  ;;  %s3922_s11 = smov (!%p213_p2), 104   ;;  %s3924_s9 = smov (!%p213_p2), 40  }
   0xa   : > { %3404 = vmatprep.subr.bf16.mxu0 (!%p213_p2), %v3403_v5 }
   0xd   : > { %s4747_s22 = smov (!%p242_p3, %s2748_s22), 1  ;;  %3406 = vmatpush3.bf16.msra.mxu0 %v3403_v5 }
   0xe   : > { %s2921_s7 = sshll.u32 %s4747_s22, 6 }
   0xf   : > { %s246_s10 = scalar_lea.vmem %s4737_s0, %s2921_s7  ;;  %s251_s16 = scalar_lea.vmem %s4743_s6, %s2921_s7 }
  0x10   : > { %v252_v6 = vld [vmem:[%s246_s10] sm:$0xff]  ;;  %v253_v7 = vld [vmem:[%s246_s10 + $0x8] sm:$0xff]  ;;  %v254_v8 = vld [vmem:[%s246_s10 + $0x10] sm:$0xff] }
  0x11   : > { %3107 = vmatprep.mubr.msk.f32.mxu0 %vm271_vm0, %v252_v6  ;;  %v255_v9 = vld [vmem:[%s246_s10 + $0x18] sm:$0xff]  ;;  %v256_v10 = vld [vmem:[%s246_s10 + $0x20] sm:$0xff]  ;;  %v257_v11 = vld [vmem:[%s246_s10 + $0x28] sm:$0xff] }
  0x12   : > { %3108 = vmatmul.mubr.msk.f32.vlgmr.msra.gmra.mrb[0].mxu0 %vm271_vm0, %v253_v7  ;;  %v258_v12 = vld [vmem:[%s246_s10 + $0x30] sm:$0xff]  ;;  %v259_v13 = vld [vmem:[%s246_s10 + $0x38] sm:$0xff]  ;;  %s3921_s10 = smov 72  }
  0x13   : > { %3110 = vmatprep.mubr.msk.f32.mxu0 %vm271_vm0, %v254_v8 }
  0x16   : > { %3111 = vmatmul.mubr.msk.f32.gmra.mrb[2].mxu0 %vm271_vm0, %v255_v9 }
  0x17   : > { %3113 = vmatprep.mubr.msk.f32.mxu0 %vm271_vm0, %v256_v10  ;;  %v576_v10 = vld [vmem:[%s4740_s3 + $0x8] sm:$0xff] }
  0x1a   : > { %3114 = vmatmul.mubr.msk.f32.gmra.mrb[4].mxu0 %vm271_vm0, %v257_v11 }
  0x1b   : > { %3116 = vmatprep.mubr.msk.f32.mxu0 %vm271_vm0, %v258_v12 }
  0x1e   : > { %3117 = vmatmul.mubr.msk.f32.gmra.mrb[6].mxu0 %vm271_vm0, %v259_v13  ;;  %v575_v13 = vld [vmem:[%s4740_s3] sm:$0xff] }
  0xe5   : > { %v3109_v15 = vpop.f32.mrb[0].mxu0 }
  0xe6   : > { %v3999_v16 = vadd.f32 %v3109_v15, %v2757_v14  ;;  %v362_v17 = vpop.f32.mrb[1].mxu0 }
  0xe7   : > { %v4001_v18 = vadd.f32 %v2757_v14, %v362_v17 }
  0xe9   : > { %v3112_v19 = vpop.f32.mrb[2].mxu0  ;;  %3135 = vmatprep.mubr.msk.f32.mxu1 %vm429_vm1, %v4001_v18  ;;  %v4007_v20 = vpack.i.bf16 %v3999_v16, %v4001_v18 }
  0xea   : > { %v4009_v21 = vadd.f32 %v3112_v19, %v2757_v14  ;;  %v372_v22 = vpop.f32.mrb[3].mxu0 }
  0xeb   : > { %v4011_v23 = vadd.f32 %v2757_v14, %v372_v22  ;;  %3619 = vrot.lane.b32.xlu0 %v4007_v20, %s3914_s13  ;;  %v578_v22 = vld [vmem:[%s4740_s3 + $0x18] sm:$0xff] }
  0xed   : > { %v3115_v24 = vpop.f32.mrb[4].mxu0  ;;  %v4016_v25 = vpack.i.bf16 %v4009_v21, %v4011_v23 }
  0xee   : > { %v4018_v26 = vadd.f32 %v3115_v24, %v2757_v14  ;;  %v382_v27 = vpop.f32.mrb[5].mxu0 }
  0xef   : > { %v4020_v28 = vadd.f32 %v2757_v14, %v382_v27  ;;  %3624 = vrot.lane.b32.xlu0 %v4016_v25, %s3914_s13 }
  0xf1   : > { %v3118_v29 = vpop.f32.mrb[6].mxu0  ;;  %v4025_v30 = vpack.i.bf16 %v4018_v26, %v4020_v28 }
  0xf2   : > { %v4027_v31 = vadd.f32 %v3118_v29, %v2757_v14  ;;  %v392_v32 = vpop.f32.mrb[7].mxu0 }
  0xf3   : > { %v4029_v33 = vadd.f32 %v2757_v14, %v392_v32  ;;  %3629 = vrot.lane.b32.xlu1 %v4025_v30, %s3914_s13  ;;  %3639 = vrot.lane.b32.xlu0 %v4007_v20, %s3915_s14  ;;  %v577_v32 = vld [vmem:[%s4740_s3 + $0x10] sm:$0xff] }
  0xf5   : > { %v4035_v34 = vpack.i.bf16 %v4027_v31, %v4029_v33 }
  0xf7   : > { %3634 = vrot.lane.b32.xlu1 %v4035_v34, %s3914_s13  ;;  %3649 = vrot.lane.b32.xlu0 %v4025_v30, %s3915_s14  ;;  %s3919_s13 = smov 112  }
  0xfb   : > { %3644 = vrot.lane.b32.xlu1 %v4016_v25, %s3915_s14  ;;  %3654 = vrot.lane.b32.xlu0 %v4007_v20, %s3916_s15 }
  0xff   : > { %3659 = vrot.lane.b32.xlu1 %v4016_v25, %s3916_s15 }
 0x103   : > { %3664 = vrot.lane.b32.xlu1 %v4035_v34, %s3915_s14  ;;  %s3920_s14 = smov 56  }
 0x15d   : > { %v3620_v35 = vpop.permute.xlu0 %3619 }
 0x15e   : > { %v3622_v36 = vunpack.i.h.bf16 %v3620_v35  ;;  %v3621_v37 = vunpack.i.l.bf16 %v3620_v35 }
 0x160   : > { %v3407_v39 = vpack.c.bf16 %v3622_v36, %v3621_v37 }
 0x161   : > { %v3625_v40 = vpop.permute.xlu0 %3624 }
 0x162   : > { %v3627_v41 = vunpack.i.h.bf16 %v3625_v40  ;;  %v3626_v42 = vunpack.i.l.bf16 %v3625_v40  ;;  %3409 = vmatprep.subr.msk.bf16.mxu1 %vm4047_vm2, %v3407_v39 }
 0x163   : > { %3412 = vmatpush3.bf16.xpose.msk.msra.mxu1 %vm4047_vm2, %v3407_v39 }
 0x164   : > { %v3413_v43 = vpack.c.bf16 %v3627_v41, %v3626_v42  ;;  %v580_v41 = vld [vmem:[%s4740_s3 + $0x28] sm:$0xff] }
 0x165   : > { %v3630_v44 = vpop.permute.xlu1 %3629  ;;  %v3640_v45 = vpop.permute.xlu0 %3639 }
 0x166   : > { %v3632_v46 = vunpack.i.h.bf16 %v3630_v44  ;;  %v3631_v47 = vunpack.i.l.bf16 %v3630_v44  ;;  %v3642_v48 = vunpack.i.h.bf16 %v3640_v45  ;;  %v3641_v49 = vunpack.i.l.bf16 %v3640_v45  ;;  %3415 = vmatprep.subr.msk.bf16.mxu1 %vm4047_vm2, %v3413_v43 }
 0x168   : > { %v3419_v50 = vpack.c.bf16 %v3632_v46, %v3631_v47  ;;  %v3431_v51 = vpack.c.bf16 %v3642_v48, %v3641_v49  ;;  %v579_v48 = vld [vmem:[%s4740_s3 + $0x20] sm:$0xff] }
 0x169   : > { %v3635_v52 = vpop.permute.xlu1 %3634  ;;  %v3650_v55 = vpop.permute.xlu0 %3649 }
 0x16a   : > { %3432 = vmatprep.subr.bf16.mxu0 %v3431_v51  ;;  %v3637_v53 = vunpack.i.h.bf16 %v3635_v52  ;;  %v3636_v54 = vunpack.i.l.bf16 %v3635_v52  ;;  %v3652_v57 = vunpack.i.h.bf16 %v3650_v55  ;;  %v3651_v58 = vunpack.i.l.bf16 %v3650_v55  ;;  %v582_v55 = vld [vmem:[%s4740_s3 + $0x38] sm:$0xff] }
 0x16b   : > { %3418 = vmatpush3.bf16.xpose.msk.msra.mxu1 %vm4047_vm2, %v3413_v43  ;;  %3434 = vmatpush3.bf16.msra.mxu0 %v3431_v51 }
 0x16c   : > { %3421 = vmatprep.subr.msk.bf16.mxu1 %vm4047_vm2, %v3419_v50  ;;  %v3425_v61 = vpack.c.bf16 %v3637_v53, %v3636_v54  ;;  %v3439_v0 = vpack.c.bf16 %v3652_v57, %v3651_v58  ;;  %v581_v58 = vld [vmem:[%s4740_s3 + $0x30] sm:$0xff] }
 0x16d   : > { %v3645_v56 = vpop.permute.xlu1 %3644  ;;  %v3655_v1 = vpop.permute.xlu0 %3654 }
 0x16e   : > { %v3647_v59 = vunpack.i.h.bf16 %v3645_v56  ;;  %v3646_v60 = vunpack.i.l.bf16 %v3645_v56  ;;  %v3657_v3 = vunpack.i.h.bf16 %v3655_v1  ;;  %v3656_v4 = vunpack.i.l.bf16 %v3655_v1 }
 0x170   : > { %v3435_v62 = vpack.c.bf16 %v3647_v59, %v3646_v60  ;;  %v4067_v8 = vpack.c.bf16 %v3657_v3, %v3656_v4 }
 0x171   : > { %v4061_v63 = vpop.permute.xlu1 %3659 }
 0x172   : > { %3436 = vmatprep.subr.bf16.mxu0 %v3435_v62 }
 0x173   : > { %3424 = vmatpush3.bf16.xpose.msk.msra.mxu1 %vm4047_vm2, %v3419_v50  ;;  %3438 = vmatpush3.bf16.msra.mxu0 %v3435_v62 }
 0x174   : > { %3440 = vmatprep.subr.bf16.mxu0 %v3439_v0  ;;  %3427 = vmatprep.subr.msk.bf16.mxu1 %vm4047_vm2, %v3425_v61 }
 0x175   : > { %v3665_v2 = vpop.permute.xlu1 %3664 }
 0x176   : > { %v3667_v5 = vunpack.i.h.bf16 %v3665_v2  ;;  %v3666_v6 = vunpack.i.l.bf16 %v3665_v2 }
 0x177   : > { %3442 = vmatpush3.bf16.msra.mxu0 %v3439_v0 }
 0x178   : > { %v3443_v7 = vpack.c.bf16 %v3667_v5, %v3666_v6 }
 0x17a   : > { %3444 = vmatprep.subr.bf16.mxu0 %v3443_v7 }
 0x17b   : > { %3430 = vmatpush3.bf16.xpose.msk.msra.mxu1 %vm4047_vm2, %v3425_v61  ;;  %3446 = vmatpush3.bf16.msra.mxu0 %v3443_v7 }
 0x17c   : > { %3449 = vmatprep.subr.msk.bf16.mxu0 %vm4047_vm2, %v4067_v8 }
 0x182   : > { %3136 = vmatmul.mubr.msk.f32.vlgmr.msra.gmra.mrb[0].mxu1 %vm429_vm1, %v3999_v16 }
 0x183   : > { %3138 = vmatprep.mubr.msk.f32.mxu1 %vm429_vm1, %v4011_v23 }
 0x186   : > { %3139 = vmatmul.mubr.msk.f32.gmra.mrb[2].mxu1 %vm429_vm1, %v4009_v21 }
 0x187   : > { %3141 = vmatprep.mubr.msk.f32.mxu1 %vm429_vm1, %v4020_v28 }
 0x18a   : > { %3142 = vmatmul.mubr.msk.f32.gmra.mrb[4].mxu1 %vm429_vm1, %v4018_v26 }
 0x18b   : > { %3144 = vmatprep.mubr.msk.f32.mxu1 %vm429_vm1, %v4029_v33 }
 0x18e   : > { %3145 = vmatmul.mubr.msk.f32.gmra.mrb[6].mxu1 %vm429_vm1, %v4027_v31 }
 0x255   : > { %v3137_v9 = vpop.f32.mrb[0].mxu1 }
 0x256   : > { %v568_v11 = vmul.f32 0.35355338, %v3137_v9  ;;  %v528_v12 = vpop.f32.mrb[1].mxu1 }
 0x257   : > { %v567_v14 = vmul.f32 0.35355338, %v528_v12 }
 0x258   : > { %v4094_v15 = vadd.f32 %v576_v10, %v568_v11 }
 0x259   : > { %v3140_v17 = vpop.f32.mrb[2].mxu1  ;;  %v4096_v19 = vadd.f32 %v575_v13, %v567_v14 }
 0x25a   : > { %v570_v24 = vmul.f32 0.35355338, %v3140_v17  ;;  %v538_v27 = vpop.f32.mrb[3].mxu1  ;;  %v595_v29 = vsel %vm591_vm3, %v4094_v15, -inf  ;;  %v3661_v17 = vunpack.i.l.bf16 %v4061_v63 }
 0x25b   : > { %v569_v35 = vmul.f32 0.35355338, %v538_v27  ;;  %596 = vmax.xlane.f32.xlu1 %v595_v29  ;;  %v592_v36 = vsel %vm591_vm3, %v4096_v19, -inf }
 0x25c   : > { %593 = vmax.xlane.f32.xlu0 %v592_v36  ;;  %v4108_v37 = vadd.f32 %v578_v22, %v570_v24 }
 0x25d   : > { %v3143_v39 = vpop.f32.mrb[4].mxu1  ;;  %v4110_v40 = vadd.f32 %v577_v32, %v569_v35 }
 0x25e   : > { %v572_v42 = vmul.f32 0.35355338, %v3143_v39  ;;  %v548_v43 = vpop.f32.mrb[5].mxu1  ;;  %v601_v44 = vsel %vm591_vm3, %v4108_v37, -inf }
 0x25f   : > { %v571_v45 = vmul.f32 0.35355338, %v548_v43  ;;  %602 = vmax.xlane.f32.xlu1 %v601_v44  ;;  %v598_v46 = vsel %vm591_vm3, %v4110_v40, -inf }
 0x260   : > { %599 = vmax.xlane.f32.xlu0 %v598_v46  ;;  %v4119_v47 = vadd.f32 %v580_v41, %v572_v42 }
 0x261   : > { %v3146_v49 = vpop.f32.mrb[6].mxu1  ;;  %v4126_v52 = vadd.f32 %v579_v48, %v571_v45 }
 0x262   : > { %v558_v50 = vpop.f32.mrb[7].mxu1  ;;  %v607_v51 = vsel %vm591_vm3, %v4119_v47, -inf  ;;  %v574_v54 = vmul.f32 0.35355338, %v3146_v49 }
 0x263   : > { %v604_v53 = vsel %vm591_vm3, %v4126_v52, -inf  ;;  %v573_v56 = vmul.f32 0.35355338, %v558_v50 }
 0x264   : > { %608 = vmax.xlane.f32.xlu0 %v607_v51  ;;  %v4141_v57 = vadd.f32 %v582_v55, %v574_v54 }
 0x265   : > { %v4149_v60 = vadd.f32 %v581_v58, %v573_v56 }
 0x266   : > { %v613_v59 = vsel %vm591_vm3, %v4141_v57, -inf }
 0x267   : > { %v610_v61 = vsel %vm591_vm3, %v4149_v60, -inf }
 0x268   : > { %605 = vmax.xlane.f32.xlu0 %v604_v53 }
 0x270   : > { %3674 = vrot.lane.b32.xlu1 %v4035_v34, %s3916_s15 }
 0x27e   : > { %3669 = vrot.lane.b32.xlu0 %v4025_v30, %s3916_s15 }
 0x282   : > { %833 = vrot.lane.b32.xlu0 %v4001_v18, %s3917_s30 }
 0x286   : > { %837 = vrot.lane.b32.xlu0 %v4011_v23, %s3917_s30 }
 0x28a   : > { %841 = vrot.lane.b32.xlu0 %v4020_v28, %s3917_s30 }
 0x28e   : > { %845 = vrot.lane.b32.xlu0 %v4029_v33, %s3917_s30 }
 0x292   : > { %3679 = vrot.lane.b32.xlu0 %v4007_v20, %s3918_s12 }
 0x294   : > { %614 = vmax.xlane.f32.xlu1 %v613_v59 }
 0x296   : > { %3689 = vrot.lane.b32.xlu0 %v4025_v30, %s3918_s12 }
 0x298   : > { %611 = vmax.xlane.f32.xlu1 %v610_v61 }
 0x29a   : > { %1526 = vrot.lane.b32.xlu0 %v4001_v18, %s3919_s13 }
 0x29e   : > { %1530 = vrot.lane.b32.xlu0 %v4011_v23, %s3919_s13 }
 0x2a2   : > { %1534 = vrot.lane.b32.xlu0 %v4020_v28, %s3919_s13 }
 0x2a6   : > { %1538 = vrot.lane.b32.xlu0 %v4029_v33, %s3919_s13 }
 0x2a9   : > { %835 = vrot.lane.b32.xlu1 %v3999_v16, %s3917_s30 }
 0x2aa   : > { %3699 = vrot.lane.b32.xlu0 %v4007_v20, %s3920_s14 }
 0x2ad   : > { %839 = vrot.lane.b32.xlu1 %v4009_v21, %s3917_s30 }
 0x2b1   : > { %843 = vrot.lane.b32.xlu1 %v4018_v26, %s3917_s30 }
 0x2b5   : > { %847 = vrot.lane.b32.xlu1 %v4027_v31, %s3917_s30  ;;  %s3923_s30 = smov 48  }
 0x2b9   : > { %3684 = vrot.lane.b32.xlu1 %v4016_v25, %s3918_s12 }
 0x2bd   : > { %3694 = vrot.lane.b32.xlu1 %v4035_v34, %s3918_s12 }
 0x2c1   : > { %1528 = vrot.lane.b32.xlu1 %v3999_v16, %s3919_s13 }
 0x2c5   : > { %1532 = vrot.lane.b32.xlu1 %v4009_v21, %s3919_s13 }
 0x2c9   : > { %1536 = vrot.lane.b32.xlu1 %v4018_v26, %s3919_s13 }
 0x2cd   : > { %1540 = vrot.lane.b32.xlu1 %v4027_v31, %s3919_s13 }
 0x2d1   : > { %3704 = vrot.lane.b32.xlu1 %v4016_v25, %s3920_s14 }
 0x2e8   : > { %v597_v62 = vpop.xlane.xlu1 %596 }
 0x2e9   : > { %v617_v0 = vsub.f32 %v4094_v15, %v597_v62  ;;  %v594_v1 = vpop.xlane.xlu0 %593  ;;  %v3662_v15 = vunpack.i.h.bf16 %v4061_v63 }
 0x2ea   : > { %v616_v2 = vsub.f32 %v4096_v19, %v594_v1 }
 0x2eb   : > { %v626_v3 = vmul.f32 1.442695, %v617_v0  ;;  %v3453_v35 = vpack.c.bf16 %v3662_v15, %v3661_v17 }
 0x2ec   : > { %v624_v4 = vmul.f32 1.442695, %v616_v2  ;;  %v603_v5 = vpop.xlane.xlu1 %602 }
 0x2ed   : > { %v619_v6 = vsub.f32 %v4108_v37, %v603_v5  ;;  %v600_v7 = vpop.xlane.xlu0 %599 }
 0x2ee   : > { %3778 = vpow2.f32 %v624_v4  ;;  %v618_v9 = vsub.f32 %v4110_v40, %v600_v7 }
 0x2ef   : > { %3780 = vpow2.f32 %v626_v3  ;;  %v630_v10 = vmul.f32 1.442695, %v619_v6 }
 0x2f0   : > { %v628_v11 = vmul.f32 1.442695, %v618_v9  ;;  %v3675_v43 = vpop.permute.xlu1 %3674 }
 0x2f1   : > { %v609_v12 = vpop.xlane.xlu0 %608  ;;  %v3677_v46 = vunpack.i.h.bf16 %v3675_v43 }
 0x2f2   : > { %3782 = vpow2.f32 %v628_v11  ;;  %v621_v13 = vsub.f32 %v4119_v47, %v609_v12  ;;  %v3676_v47 = vunpack.i.l.bf16 %v3675_v43 }
 0x2f3   : > { %3784 = vpow2.f32 %v630_v10 }
 0x2f4   : > { %v634_v22 = vmul.f32 1.442695, %v621_v13  ;;  %v3465_v49 = vpack.c.bf16 %v3677_v46, %v3676_v47 }
 0x2f5   : > { %v606_v14 = vpop.xlane.xlu0 %605 }
 0x2f6   : > { %v620_v19 = vsub.f32 %v4126_v52, %v606_v14 }
 0x2f8   : > { %v4180_v24 = vpop.eup %3778  ;;  %v632_v27 = vmul.f32 1.442695, %v620_v19 }
 0x2f9   : > { %v4182_v29 = vpop.eup %3780  ;;  %3163 = vmatprep.mubr.msk.f32.mxu0 %vm591_vm3, %v4180_v24  ;;  %v3670_v32 = vpop.permute.xlu0 %3669 }
 0x2fa   : > { %3786 = vpow2.f32 %v632_v27  ;;  %3164 = vmatmul.mubr.msk.f32.vlgmr.msra.gmra.mrb[8].mxu0 %vm591_vm3, %v4182_v29  ;;  %v3672_v39 = vunpack.i.h.bf16 %v3670_v32  ;;  %v3671_v40 = vunpack.i.l.bf16 %v3670_v32 }
 0x2fb   : > { %3788 = vpow2.f32 %v634_v22  ;;  %3452 = vmatpush3.bf16.xpose.msk.msra.mxu0 %vm4047_vm2, %v4067_v8 }
 0x2fc   : > { %v4191_v63 = vpop.eup %3782  ;;  %3455 = vmatprep.subr.msk.bf16.mxu0 %vm4047_vm2, %v3453_v35  ;;  %v3459_v42 = vpack.c.bf16 %v3672_v39, %v3671_v40 }
 0x2fd   : > { %v4195_v36 = vpop.eup %3784  ;;  %3166 = vmatprep.mubr.msk.f32.mxu0 %vm591_vm3, %v4191_v63  ;;  %v834_v37 = vpop.permute.xlu0 %833 }
 0x2fe   : > { %3167 = vmatmul.mubr.msk.f32.gmra.mrb[10].mxu0 %vm591_vm3, %v4195_v36 }
 0x301   : > { %v838_v41 = vpop.permute.xlu0 %837 }
 0x303   : > { %3458 = vmatpush3.bf16.xpose.msk.msra.mxu0 %vm4047_vm2, %v3453_v35 }
 0x304   : > { %v4203_v8 = vpop.eup %3786  ;;  %3461 = vmatprep.subr.msk.bf16.mxu0 %vm4047_vm2, %v3459_v42 }
 0x305   : > { %v4207_v44 = vpop.eup %3788  ;;  %3169 = vmatprep.mubr.msk.f32.mxu0 %vm591_vm3, %v4203_v8  ;;  %v842_v45 = vpop.permute.xlu0 %841 }
 0x306   : > { %3170 = vmatmul.mubr.msk.f32.gmra.mrb[12].mxu0 %vm591_vm3, %v4207_v44 }
 0x309   : > { %v846_v48 = vpop.permute.xlu0 %845 }
 0x30b   : > { %3464 = vmatpush3.bf16.xpose.msk.msra.mxu0 %vm4047_vm2, %v3459_v42 }
 0x30c   : > { %3467 = vmatprep.subr.msk.bf16.mxu0 %vm4047_vm2, %v3465_v49 }
 0x30d   : > { %v3680_v50 = vpop.permute.xlu0 %3679 }
 0x30e   : > { %v3682_v51 = vunpack.i.h.bf16 %v3680_v50  ;;  %v3681_v52 = vunpack.i.l.bf16 %v3680_v50 }
 0x310   : > { %v3487_v53 = vpack.c.bf16 %v3682_v51, %v3681_v52 }
 0x311   : > { %v3690_v54 = vpop.permute.xlu0 %3689 }
 0x312   : > { %v3692_v22 = vunpack.i.h.bf16 %v3690_v54  ;;  %v3691_v27 = vunpack.i.l.bf16 %v3690_v54 }
 0x313   : > { %3470 = vmatpush3.bf16.xpose.msk.msra.mxu0 %vm4047_vm2, %v3465_v49 }
 0x314   : > { %3489 = vmatprep.subr.msk.bf16.mxu0 %vm4047_vm2, %v3487_v53  ;;  %v3499_v35 = vpack.c.bf16 %v3692_v22, %v3691_v27 }
 0x315   : > { %v1527_v55 = vpop.permute.xlu0 %1526 }
 0x319   : > { %v4221_v56 = vpop.permute.xlu0 %1530 }
 0x31d   : > { %v4223_v58 = vpop.permute.xlu0 %1534 }
 0x321   : > { %v4225_v59 = vpop.permute.xlu0 %1538  ;;  %v615_v61 = vpop.xlane.xlu1 %614 }
 0x322   : > { %v623_v62 = vsub.f32 %v4141_v57, %v615_v61 }
 0x324   : > { %v638_v5 = vmul.f32 1.442695, %v623_v62 }
 0x325   : > { %v3700_v0 = vpop.permute.xlu0 %3699  ;;  %v612_v1 = vpop.xlane.xlu1 %611 }
 0x326   : > { %v3702_v2 = vunpack.i.h.bf16 %v3700_v0  ;;  %v3701_v3 = vunpack.i.l.bf16 %v3700_v0  ;;  %v622_v4 = vsub.f32 %v4149_v60, %v612_v1  ;;  %v2806_v0 = vld [vmem:[%s4740_s3 + $0x40] sm:$0xff] }
 0x328   : > { %v3471_v6 = vpack.c.bf16 %v3702_v2, %v3701_v3  ;;  %v636_v7 = vmul.f32 1.442695, %v622_v4 }
 0x329   : > { %v836_v9 = vpop.permute.xlu1 %835 }
 0x32a   : > { %3790 = vpow2.f32 %v636_v7  ;;  %3472 = vmatprep.subr.bf16.mxu1 %v3471_v6 }
 0x32b   : > { %3792 = vpow2.f32 %v638_v5  ;;  %3474 = vmatpush3.bf16.msra.mxu1 %v3471_v6  ;;  %v2809_v5 = vld [vmem:[%s4740_s3 + $0x58] sm:$0xff] }
 0x32d   : > { %v840_v10 = vpop.permute.xlu1 %839 }
 0x331   : > { %v844_v11 = vpop.permute.xlu1 %843 }
 0x334   : > { %v4229_v12 = vpop.eup %3790 }
 0x335   : > { %v4231_v13 = vpop.eup %3792  ;;  %3172 = vmatprep.mubr.msk.f32.mxu0 %vm591_vm3, %v4229_v12  ;;  %v848_v57 = vpop.permute.xlu1 %847 }
 0x336   : > { %3173 = vmatmul.mubr.msk.f32.gmra.mrb[14].mxu0 %vm591_vm3, %v4231_v13 }
 0x337   : > { %3191 = vmatprep.mubr.msk.f32.mxu0 %vm429_vm1, %v834_v37 }
 0x339   : > { %v3685_v60 = vpop.permute.xlu1 %3684 }
 0x33a   : > { %v3687_v14 = vunpack.i.h.bf16 %v3685_v60  ;;  %v3686_v15 = vunpack.i.l.bf16 %v3685_v60  ;;  %3192 = vmatmul.mubr.msk.f32.vlgmr.msra.gmra.mrb[16].mxu0 %vm429_vm1, %v836_v9  ;;  %v2808_v60 = vld [vmem:[%s4740_s3 + $0x50] sm:$0xff] }
 0x33b   : > { %3492 = vmatpush3.bf16.xpose.msk.msra.mxu0 %vm4047_vm2, %v3487_v53  ;;  %3194 = vmatprep.mubr.msk.f32.mxu0 %vm429_vm1, %v838_v41 }
 0x33c   : > { %v3493_v17 = vpack.c.bf16 %v3687_v14, %v3686_v15 }
 0x33d   : > { %v3695_v19 = vpop.permute.xlu1 %3694 }
 0x33e   : > { %3195 = vmatmul.mubr.msk.f32.gmra.mrb[18].mxu0 %vm429_vm1, %v840_v10  ;;  %3495 = vmatprep.subr.msk.bf16.mxu0 %vm4047_vm2, %v3493_v17  ;;  %v3697_v39 = vunpack.i.h.bf16 %v3695_v19  ;;  %v3696_v40 = vunpack.i.l.bf16 %v3695_v19  ;;  %v2810_v19 = vld [vmem:[%s4740_s3 + $0x60] sm:$0xff] }
 0x33f   : > { %3197 = vmatprep.mubr.msk.f32.mxu0 %vm429_vm1, %v842_v45 }
 0x340   : > { %v3505_v42 = vpack.c.bf16 %v3697_v39, %v3696_v40  ;;  %v2813_v40 = vld [vmem:[%s4740_s3 + $0x78] sm:$0xff] }
 0x341   : > { %v1529_v32 = vpop.permute.xlu1 %1528 }
 0x342   : > { %3198 = vmatmul.mubr.msk.f32.gmra.mrb[20].mxu0 %vm429_vm1, %v844_v11 }
 0x343   : > { %3498 = vmatpush3.bf16.xpose.msk.msra.mxu0 %vm4047_vm2, %v3493_v17  ;;  %3200 = vmatprep.mubr.msk.f32.mxu0 %vm429_vm1, %v846_v48 }
 0x344   : > { %3501 = vmatprep.subr.msk.bf16.mxu0 %vm4047_vm2, %v3499_v35 }
 0x345   : > { %v1533_v37 = vpop.permute.xlu1 %1532 }
 0x346   : > { %3201 = vmatmul.mubr.msk.f32.gmra.mrb[22].mxu0 %vm429_vm1, %v848_v57 }
 0x347   : > { %3275 = vmatprep.mubr.msk.f32.mxu0 %vm429_vm1, %v1527_v55 }
 0x349   : > { %v1537_v41 = vpop.permute.xlu1 %1536 }
 0x34b   : > { %3504 = vmatpush3.bf16.xpose.msk.msra.mxu0 %vm4047_vm2, %v3499_v35  ;;  %v2811_v35 = vld [vmem:[%s4740_s3 + $0x68] sm:$0xff] }
 0x34c   : > { %3507 = vmatprep.subr.msk.bf16.mxu0 %vm4047_vm2, %v3505_v42 }
 0x34d   : > { %v1541_v43 = vpop.permute.xlu1 %1540 }
 0x351   : > { %v3705_v45 = vpop.permute.xlu1 %3704 }
 0x352   : > { %v3707_v46 = vunpack.i.h.bf16 %v3705_v45  ;;  %v3706_v47 = vunpack.i.l.bf16 %v3705_v45 }
 0x353   : > { %3510 = vmatpush3.bf16.xpose.msk.msra.mxu0 %vm4047_vm2, %v3505_v42 }
 0x354   : > { %v3475_v48 = vpack.c.bf16 %v3707_v46, %v3706_v47 }
 0x356   : > { %3476 = vmatprep.subr.bf16.mxu1 %v3475_v48 }
 0x357   : > { %3478 = vmatpush3.bf16.msra.mxu1 %v3475_v48 }
 0x35a   : > { %3276 = vmatmul.mubr.msk.f32.vlgmr.msra.gmra.mrb[24].mxu0 %vm429_vm1, %v1529_v32 }
 0x35b   : > { %3278 = vmatprep.mubr.msk.f32.mxu0 %vm429_vm1, %v4221_v56 }
 0x35e   : > { %3279 = vmatmul.mubr.msk.f32.gmra.mrb[26].mxu0 %vm429_vm1, %v1533_v37 }
 0x35f   : > { %3281 = vmatprep.mubr.msk.f32.mxu0 %vm429_vm1, %v4223_v58 }
 0x362   : > { %3282 = vmatmul.mubr.msk.f32.gmra.mrb[28].mxu0 %vm429_vm1, %v1537_v41 }
 0x363   : > { %3284 = vmatprep.mubr.msk.f32.mxu0 %vm429_vm1, %v4225_v59  ;;  %v2807_v59 = vld [vmem:[%s4740_s3 + $0x48] sm:$0xff] }
 0x366   : > { %3285 = vmatmul.mubr.msk.f32.gmra.mrb[30].mxu0 %vm429_vm1, %v1541_v43 }
 0x3cd   : > { %v4270_v49 = vpop.f32.mrb[8].mxu0 }
 0x3ce   : > { %v4272_v50 = vpop.f32.mrb[9].mxu0 }
 0x3d1   : > { %v4274_v51 = vpop.f32.mrb[10].mxu0 }
 0x3d2   : > { %v4276_v52 = vpop.f32.mrb[11].mxu0 }
 0x3d9   : > { %v4278_v53 = vpop.f32.mrb[12].mxu0 }
 0x3da   : > { %v4280_v54 = vpop.f32.mrb[13].mxu0 }
 0x409   : > { %v4282_v55 = vpop.f32.mrb[14].mxu0 }
 0x40a   : > { %v4284_v56 = vpop.f32.mrb[15].mxu0 }
 0x40d   : > { %v3193_v58 = vpop.f32.mrb[16].mxu0 }
 0x40e   : > { %v1003_v61 = vmul.f32 0.35355338, %v3193_v58  ;;  %v963_v62 = vpop.f32.mrb[17].mxu0  ;;  %v2812_v58 = vld [vmem:[%s4740_s3 + $0x70] sm:$0xff] }
 0x40f   : > { %v1002_v1 = vmul.f32 0.35355338, %v963_v62 }
 0x410   : > { %v4292_v2 = vadd.f32 %v2807_v59, %v1003_v61 }
 0x411   : > { %v3196_v3 = vpop.f32.mrb[18].mxu0  ;;  %v4294_v4 = vadd.f32 %v2806_v0, %v1002_v1 }
 0x412   : > { %v1005_v6 = vmul.f32 0.35355338, %v3196_v3  ;;  %v973_v7 = vpop.f32.mrb[19].mxu0  ;;  %v1030_v9 = vsel %vm591_vm3, %v4292_v2, -inf }
 0x413   : > { %v1004_v10 = vmul.f32 0.35355338, %v973_v7  ;;  %1031 = vmax.xlane.f32.xlu1 %v1030_v9  ;;  %v1027_v11 = vsel %vm591_vm3, %v4294_v4, -inf }
 0x414   : > { %1028 = vmax.xlane.f32.xlu0 %v1027_v11  ;;  %v4303_v57 = vadd.f32 %v2809_v5, %v1005_v6 }
 0x415   : > { %v3199_v14 = vpop.f32.mrb[20].mxu0  ;;  %v4313_v32 = vadd.f32 %v2808_v60, %v1004_v10  ;;  %v643_v60 = vsel %vm591_vm3, %v4182_v29, 0.0  ;;  %v652_v29 = vsel %vm591_vm3, %v4203_v8, 0.0 }
 0x416   : > { %v983_v15 = vpop.f32.mrb[21].mxu0  ;;  %v1036_v17 = vsel %vm591_vm3, %v4303_v57, -inf  ;;  %v1007_v22 = vmul.f32 0.35355338, %v3199_v14  ;;  %v658_v14 = vsel %vm591_vm3, %v4229_v12, 0.0 }
 0x417   : > { %v1006_v27 = vmul.f32 0.35355338, %v983_v15  ;;  %v1033_v45 = vsel %vm591_vm3, %v4313_v32, -inf }
 0x418   : > { %1037 = vmax.xlane.f32.xlu0 %v1036_v17  ;;  %v4327_v47 = vadd.f32 %v2811_v35, %v1007_v22  ;;  %v2856_v22 = vld [vmem:[%s4740_s3 + $0x90] sm:$0xff] }
 0x419   : > { %v3202_v37 = vpop.f32.mrb[22].mxu0  ;;  %v4318_v39 = vadd.f32 %v2810_v19, %v1006_v27  ;;  %v2859_v27 = vld [vmem:[%s4740_s3 + $0xa8] sm:$0xff] }
 0x41a   : > { %v1009_v41 = vmul.f32 0.35355338, %v3202_v37  ;;  %v993_v42 = vpop.f32.mrb[23].mxu0  ;;  %v1042_v61 = vsel %vm591_vm3, %v4327_v47, -inf }
 0x41b   : > { %v1008_v43 = vmul.f32 0.35355338, %v993_v42  ;;  %v1039_v46 = vsel %vm591_vm3, %v4318_v39, -inf  ;;  %v2858_v42 = vld [vmem:[%s4740_s3 + $0xa0] sm:$0xff] }
 0x41c   : > { %1034 = vmax.xlane.f32.xlu0 %v1033_v45  ;;  %1040 = vmax.xlane.f32.xlu1 %v1039_v46  ;;  %v4329_v48 = vadd.f32 %v2813_v40, %v1009_v41 }
 0x41d   : > { %v4338_v62 = vadd.f32 %v2812_v58, %v1008_v43 }
 0x41e   : > { %v1048_v59 = vsel %vm591_vm3, %v4329_v48, -inf }
 0x41f   : > { %v1045_v0 = vsel %vm591_vm3, %v4338_v62, -inf }
 0x420   : > { %1043 = vmax.xlane.f32.xlu0 %v1042_v61  ;;  %1049 = vmax.xlane.f32.xlu1 %v1048_v59  ;;  %v2860_v59 = vld [vmem:[%s4740_s3 + $0xb0] sm:$0xff] }
 0x424   : > { %1046 = vmax.xlane.f32.xlu1 %v1045_v0 }
 0x42d   : > { %v3277_v1 = vpop.f32.mrb[24].mxu0 }
 0x42e   : > { %v1656_v3 = vpop.f32.mrb[25].mxu0 }
 0x431   : > { %v3280_v5 = vpop.f32.mrb[26].mxu0 }
 0x432   : > { %v1666_v6 = vpop.f32.mrb[27].mxu0 }
 0x435   : > { %v3283_v7 = vpop.f32.mrb[28].mxu0  ;;  %3714 = vrot.lane.b32.xlu1 %v4035_v34, %s3920_s14 }
 0x436   : > { %v1676_v9 = vpop.f32.mrb[29].mxu0  ;;  %3709 = vrot.lane.b32.xlu0 %v4025_v30, %s3920_s14  ;;  %v1700_v17 = vmul.f32 0.35355338, %v3283_v7 }
 0x437   : > { %v1699_v35 = vmul.f32 0.35355338, %v1676_v9 }
 0x438   : > { %v4405_v41 = vadd.f32 %v2859_v27, %v1700_v17 }
 0x439   : > { %v4346_v10 = vpop.f32.mrb[30].mxu0  ;;  %3724 = vrot.lane.b32.xlu1 %v4016_v25, %s3921_s10  ;;  %v4414_v58 = vadd.f32 %v2858_v42, %v1699_v35 }
 0x43a   : > { %v1686_v11 = vpop.f32.mrb[31].mxu0  ;;  %3719 = vrot.lane.b32.xlu0 %v4007_v20, %s3921_s10  ;;  %v1735_v46 = vsel %vm591_vm3, %v4405_v41, -inf }
 0x43b   : > { %v1701_v43 = vmul.f32 0.35355338, %v1686_v11  ;;  %v1732_v61 = vsel %vm591_vm3, %v4414_v58, -inf }
 0x43d   : > { %3734 = vrot.lane.b32.xlu1 %v4035_v34, %s3921_s10  ;;  %v4421_v0 = vadd.f32 %v2860_v59, %v1701_v43  ;;  %v1702_v59 = vmul.f32 0.35355338, %v4346_v10 }
 0x43e   : > { %3729 = vrot.lane.b32.xlu0 %v4025_v30, %s3921_s10 }
 0x441   : > { %2100 = vrot.lane.b32.xlu1 %v3999_v16, %s3922_s11  ;;  %v649_v16 = vsel %vm591_vm3, %v4195_v36, 0.0 }
 0x442   : > { %2098 = vrot.lane.b32.xlu0 %v4001_v18, %s3922_s11  ;;  %v640_v18 = vsel %vm591_vm3, %v4180_v24, 0.0  ;;  %v661_v24 = vsel %vm591_vm3, %v4231_v13, 0.0  ;;  %v1697_v13 = vmul.f32 0.35355338, %v1666_v6 }
 0x444   : > { %v4403_v40 = vadd.f32 %v2856_v22, %v1697_v13 }
 0x445   : > { %2104 = vrot.lane.b32.xlu1 %v4009_v21, %s3922_s11  ;;  %v1696_v21 = vmul.f32 0.35355338, %v3277_v1  ;;  %v1738_v1 = vsel %vm591_vm3, %v4421_v0, -inf }
 0x446   : > { %2102 = vrot.lane.b32.xlu0 %v4011_v23, %s3922_s11  ;;  %v655_v23 = vsel %vm591_vm3, %v4207_v44, 0.0  ;;  %v2857_v44 = vld [vmem:[%s4740_s3 + $0x98] sm:$0xff]  ;;  %v1726_v45 = vsel %vm591_vm3, %v4403_v40, -inf }
 0x449   : > { %2108 = vrot.lane.b32.xlu1 %v4018_v26, %s3922_s11  ;;  %v646_v26 = vsel %vm591_vm3, %v4191_v63, 0.0  ;;  %v2854_v63 = vld [vmem:[%s4740_s3 + $0x80] sm:$0xff] }
 0x44a   : > { %2106 = vrot.lane.b32.xlu0 %v4020_v28, %s3922_s11  ;;  %v2855_v28 = vld [vmem:[%s4740_s3 + $0x88] sm:$0xff] }
 0x44b   : > { %v4377_v36 = vadd.f32 %v2855_v28, %v1696_v21 }
 0x44d   : > { %2112 = vrot.lane.b32.xlu1 %v4027_v31, %s3922_s11  ;;  %v1695_v31 = vmul.f32 0.35355338, %v1656_v3  ;;  %v1723_v8 = vsel %vm591_vm3, %v4377_v36, -inf }
 0x44e   : > { %2110 = vrot.lane.b32.xlu0 %v4029_v33, %s3922_s11  ;;  %v1698_v33 = vmul.f32 0.35355338, %v3280_v5 }
 0x44f   : > { %v4387_v15 = vadd.f32 %v2854_v63, %v1695_v31 }
 0x450   : > { %v4391_v19 = vadd.f32 %v2857_v44, %v1698_v33 }
 0x451   : > { %v1720_v12 = vsel %vm591_vm3, %v4387_v15, -inf }
 0x452   : > { %v1729_v37 = vsel %vm591_vm3, %v4391_v19, -inf }
 0x46d   : > { %644 = vadd.xlane.f32.xlu0 %v643_v60 }
 0x471   : > { %650 = vadd.xlane.f32.xlu0 %v649_v16  ;;  %641 = vadd.xlane.f32.xlu1 %v640_v18 }
 0x475   : > { %656 = vadd.xlane.f32.xlu0 %v655_v23  ;;  %647 = vadd.xlane.f32.xlu1 %v646_v26 }
 0x479   : > { %662 = vadd.xlane.f32.xlu0 %v661_v24  ;;  %653 = vadd.xlane.f32.xlu1 %v652_v29 }
 0x47d   : > { %659 = vadd.xlane.f32.xlu1 %v658_v14  ;;  %1724 = vmax.xlane.f32.xlu0 %v1723_v8 }
 0x481   : > { %1721 = vmax.xlane.f32.xlu1 %v1720_v12  ;;  %1730 = vmax.xlane.f32.xlu0 %v1729_v37 }
 0x485   : > { %1727 = vmax.xlane.f32.xlu1 %v1726_v45  ;;  %1736 = vmax.xlane.f32.xlu0 %v1735_v46 }
 0x489   : > { %1733 = vmax.xlane.f32.xlu1 %v1732_v61 }
 0x48d   : > { %1739 = vmax.xlane.f32.xlu1 %v1738_v1 }
 0x4a0   : > { %v1032_v3 = vpop.xlane.xlu1 %1031 }
 0x4a1   : > { %v1052_v5 = vsub.f32 %v4292_v2, %v1032_v3  ;;  %v1029_v6 = vpop.xlane.xlu0 %1028  ;;  %v2861_v3 = vld [vmem:[%s4740_s3 + $0xb8] sm:$0xff] }
 0x4a2   : > { %v1051_v7 = vsub.f32 %v4294_v4, %v1029_v6 }
 0x4a3   : > { %v1061_v9 = vmul.f32 1.442695, %v1052_v5 }
 0x4a4   : > { %v1059_v11 = vmul.f32 1.442695, %v1051_v7 }
 0x4a5   : > { %3794 = vpow2.f32 %v1061_v9  ;;  %v1038_v60 = vpop.xlane.xlu0 %1037 }
 0x4a6   : > { %3796 = vpow2.f32 %v1059_v11  ;;  %v1054_v16 = vsub.f32 %v4303_v57, %v1038_v60 }
 0x4a8   : > { %v1065_v18 = vmul.f32 1.442695, %v1054_v16 }
 0x4a9   : > { %v1035_v21 = vpop.xlane.xlu0 %1034  ;;  %v1041_v23 = vpop.xlane.xlu1 %1040 }
 0x4aa   : > { %3798 = vpow2.f32 %v1065_v18  ;;  %v1053_v26 = vsub.f32 %v4313_v32, %v1035_v21  ;;  %v1055_v28 = vsub.f32 %v4318_v39, %v1041_v23  ;;  %v4447_v18 = vadd.f32 %v2861_v3, %v1702_v59 }
 0x4ac   : > { %v1063_v31 = vmul.f32 1.442695, %v1053_v26  ;;  %v1067_v2 = vmul.f32 1.442695, %v1055_v28 }
 0x4ad   : > { %v1044_v33 = vpop.xlane.xlu0 %1043  ;;  %v1050_v24 = vpop.xlane.xlu1 %1049 }
 0x4ae   : > { %3800 = vpow2.f32 %v1063_v31  ;;  %v1056_v4 = vsub.f32 %v4327_v47, %v1044_v33  ;;  %v1058_v29 = vsub.f32 %v4329_v48, %v1050_v24 }
 0x4af   : > { %v3795_v63 = vpop.eup %3794  ;;  %3802 = vpow2.f32 %v1067_v2  ;;  %v1741_v2 = vsel %vm591_vm3, %v4447_v18, -inf }
 0x4b0   : > { %v3797_v57 = vpop.eup %3796  ;;  %v1069_v44 = vmul.f32 1.442695, %v1056_v4  ;;  %v1078_v14 = vsel %vm591_vm3, %v3795_v63, 0.0  ;;  %v1073_v13 = vmul.f32 1.442695, %v1058_v29 }
 0x4b1   : > { %3219 = vmatprep.mubr.msk.f32.mxu1 %vm591_vm3, %v3797_v57  ;;  %v3710_v32 = vpop.permute.xlu0 %3709  ;;  %v1047_v39 = vpop.xlane.xlu1 %1046  ;;  %1079 = vadd.xlane.f32.xlu1 %v1078_v14  ;;  %v1075_v17 = vsel %vm591_vm3, %v3797_v57, 0.0 }
 0x4b2   : > { %3804 = vpow2.f32 %v1069_v44  ;;  %v3712_v8 = vunpack.i.h.bf16 %v3710_v32  ;;  %v3711_v22 = vunpack.i.l.bf16 %v3710_v32  ;;  %v1057_v47 = vsub.f32 %v4338_v62, %v1047_v39  ;;  %1076 = vadd.xlane.f32.xlu0 %v1075_v17 }
 0x4b3   : > { %3806 = vpow2.f32 %v1073_v13 }
 0x4b4   : > { %v3799_v48 = vpop.eup %3798  ;;  %v3479_v27 = vpack.c.bf16 %v3712_v8, %v3711_v22  ;;  %v1071_v12 = vmul.f32 1.442695, %v1057_v47 }
 0x4b5   : > { %v3720_v35 = vpop.permute.xlu0 %3719  ;;  %v3715_v37 = vpop.permute.xlu1 %3714  ;;  %v1084_v42 = vsel %vm591_vm3, %v3799_v48, 0.0 }
 0x4b6   : > { %3808 = vpow2.f32 %v1071_v12  ;;  %v3722_v43 = vunpack.i.h.bf16 %v3720_v35  ;;  %v3721_v45 = vunpack.i.l.bf16 %v3720_v35  ;;  %v3717_v46 = vunpack.i.h.bf16 %v3715_v37  ;;  %3480 = vmatprep.subr.bf16.mxu1 %v3479_v27  ;;  %1085 = vadd.xlane.f32.xlu0 %v1084_v42  ;;  %v401_v12 = vld [vmem:[%s4741_s4] sm:$0xff] }
 0x4b7   : > { %v3716_v61 = vunpack.i.l.bf16 %v3715_v37  ;;  %3482 = vmatpush3.bf16.msra.mxu1 %v3479_v27  ;;  %v402_v27 = vld [vmem:[%s4741_s4 + $0x8] sm:$0xff] }
 0x4b8   : > { %v3801_v62 = vpop.eup %3800  ;;  %v3527_v1 = vpack.c.bf16 %v3722_v43, %v3721_v45 }
 0x4b9   : > { %v3803_v5 = vpop.eup %3802  ;;  %v3483_v6 = vpack.c.bf16 %v3717_v46, %v3716_v61  ;;  %v3730_v7 = vpop.permute.xlu0 %3729  ;;  %v1081_v11 = vsel %vm591_vm3, %v3801_v62, 0.0 }
 0x4ba   : > { %v3725_v9 = vpop.permute.xlu1 %3724  ;;  %3529 = vmatprep.subr.msk.bf16.mxu0 %vm4047_vm2, %v3527_v1  ;;  %1082 = vadd.xlane.f32.xlu0 %v1081_v11  ;;  %v1087_v10 = vsel %vm591_vm3, %v3803_v5, 0.0  ;;  %v3732_v24 = vunpack.i.h.bf16 %v3730_v7  ;;  %v3731_v4 = vunpack.i.l.bf16 %v3730_v7 }
 0x4bb   : > { %v3727_v60 = vunpack.i.h.bf16 %v3725_v9  ;;  %v3726_v16 = vunpack.i.l.bf16 %v3725_v9  ;;  %3484 = vmatprep.subr.bf16.mxu1 %v3483_v6  ;;  %3532 = vmatpush3.bf16.xpose.msk.msra.mxu0 %vm4047_vm2, %v3527_v1 }
 0x4bc   : > { %v3805_v21 = vpop.eup %3804  ;;  %1088 = vadd.xlane.f32.xlu1 %v1087_v10  ;;  %3486 = vmatpush3.bf16.msra.mxu1 %v3483_v6  ;;  %v3539_v44 = vpack.c.bf16 %v3732_v24, %v3731_v4 }
 0x4bd   : > { %v3533_v23 = vpack.c.bf16 %v3727_v60, %v3726_v16  ;;  %v2099_v26 = vpop.permute.xlu0 %2098  ;;  %v1090_v28 = vsel %vm591_vm3, %v3805_v21, 0.0  ;;  %v3807_v31 = vpop.eup %3806  ;;  %3231 = vmatprep.subr.mxu1 %v402_v27 }
 0x4be   : > { %3345 = vmatprep.mubr.msk.f32.mxu0 %vm429_vm1, %v2099_v26  ;;  %1091 = vadd.xlane.f32.xlu0 %v1090_v28  ;;  %v1096_v57 = vsel %vm591_vm3, %v3807_v31, 0.0 }
 0x4bf   : > { %3535 = vmatprep.subr.msk.bf16.mxu0 %vm4047_vm2, %v3533_v23  ;;  %3220 = vmatmul.mubr.msk.f32.vlgmr.msra.gmra.mrb[8].mxu1 %vm591_vm3, %v3795_v63  ;;  %v3735_v63 = vpop.permute.xlu1 %3734 }
 0x4c0   : > { %v3809_v33 = vpop.eup %3808  ;;  %1742 = vmax.xlane.f32.xlu1 %v1741_v2  ;;  %3222 = vmatprep.mubr.msk.f32.mxu1 %vm591_vm3, %v3801_v62  ;;  %v3737_v14 = vunpack.i.h.bf16 %v3735_v63  ;;  %v3736_v13 = vunpack.i.l.bf16 %v3735_v63 }
 0x4c1   : > { %v1093_v29 = vsel %vm591_vm3, %v3809_v33, 0.0  ;;  %v2103_v17 = vpop.permute.xlu0 %2102  ;;  %3232 = vmatpush3.msra.mxu1 %v402_v27 }
 0x4c2   : > { %1097 = vadd.xlane.f32.xlu0 %v1096_v57  ;;  %v3545_v32 = vpack.c.bf16 %v3737_v14, %v3736_v13  ;;  %3245 = vmatprep.subr.mxu1 %v401_v12 }
 0x4c3   : > { %3223 = vmatmul.mubr.msk.f32.gmra.mrb[10].mxu1 %vm591_vm3, %v3799_v48  ;;  %3538 = vmatpush3.bf16.xpose.msk.msra.mxu0 %vm4047_vm2, %v3533_v23  ;;  %v2101_v39 = vpop.permute.xlu1 %2100 }
 0x4c4   : > { %1094 = vadd.xlane.f32.xlu1 %v1093_v29  ;;  %3225 = vmatprep.mubr.msk.f32.mxu1 %vm591_vm3, %v3803_v5 }
 0x4c5   : > { %3541 = vmatprep.subr.msk.bf16.mxu0 %vm4047_vm2, %v3539_v44  ;;  %v2107_v22 = vpop.permute.xlu0 %2106 }
 0x4c7   : > { %3226 = vmatmul.mubr.msk.f32.gmra.mrb[12].mxu1 %vm591_vm3, %v3805_v21  ;;  %v2105_v8 = vpop.permute.xlu1 %2104 }
 0x4c8   : > { %3228 = vmatprep.mubr.msk.f32.mxu1 %vm591_vm3, %v3809_v33 }
 0x4c9   : > { %v2111_v47 = vpop.permute.xlu0 %2110 }
 0x4cb   : > { %3229 = vmatmul.mubr.msk.f32.gmra.mrb[14].mxu1 %vm591_vm3, %v3807_v31  ;;  %3544 = vmatpush3.bf16.xpose.msk.msra.mxu0 %vm4047_vm2, %v3539_v44  ;;  %v2109_v38 = vpop.permute.xlu1 %2108 }
 0x4cc   : > { %3547 = vmatprep.subr.msk.bf16.mxu0 %vm4047_vm2, %v3545_v32 }
 0x4cf   : > { %v2113_v48 = vpop.permute.xlu1 %2112 }
 0x4d3   : > { %3550 = vmatpush3.bf16.xpose.msk.msra.mxu0 %vm4047_vm2, %v3545_v32 }
 0x4d5   : > { %3744 = vrot.lane.b32.xlu1 %v4016_v25, %s3923_s30 }
 0x4d8   : > { %3739 = vrot.lane.b32.xlu0 %v4007_v20, %s3923_s30 }
 0x4d9   : > { %3754 = vrot.lane.b32.xlu1 %v4035_v34, %s3923_s30 }
 0x4da   : > { %3346 = vmatmul.mubr.msk.f32.vlgmr.msra.gmra.mrb[32].mxu0 %vm429_vm1, %v2101_v39 }
 0x4db   : > { %3348 = vmatprep.mubr.msk.f32.mxu0 %vm429_vm1, %v2103_v17 }
 0x4dc   : > { %3749 = vrot.lane.b32.xlu0 %v4025_v30, %s3923_s30 }
 0x4de   : > { %3349 = vmatmul.mubr.msk.f32.gmra.mrb[34].mxu0 %vm429_vm1, %v2105_v8 }
 0x4df   : > { %3351 = vmatprep.mubr.msk.f32.mxu0 %vm429_vm1, %v2107_v22 }
 0x4e2   : > { %3352 = vmatmul.mubr.msk.f32.gmra.mrb[36].mxu0 %vm429_vm1, %v2109_v38 }
 0x4e3   : > { %3354 = vmatprep.mubr.msk.f32.mxu0 %vm429_vm1, %v2111_v47 }
 0x4e6   : > { %3355 = vmatmul.mubr.msk.f32.gmra.mrb[38].mxu0 %vm429_vm1, %v2113_v48 }
 0x4fa   : > { %v645_v35 = vpop.xlane.xlu0 %644 }
 0x4fe   : > { %v651_v37 = vpop.xlane.xlu0 %650  ;;  %v642_v42 = vpop.xlane.xlu1 %641 }
 0x502   : > { %v4491_v43 = vpop.xlane.xlu0 %656  ;;  %v648_v45 = vpop.xlane.xlu1 %647 }
 0x506   : > { %v4493_v46 = vpop.xlane.xlu0 %662  ;;  %v654_v59 = vpop.xlane.xlu1 %653 }
 0x50a   : > { %v4495_v61 = vpop.xlane.xlu0 %1724  ;;  %v4497_v62 = vpop.xlane.xlu1 %659 }
 0x50e   : > { %v4499_v1 = vpop.xlane.xlu0 %1730  ;;  %v4501_v3 = vpop.xlane.xlu1 %1721 }
 0x512   : > { %v4503_v5 = vpop.xlane.xlu0 %1736  ;;  %v4505_v6 = vpop.xlane.xlu1 %1727 }
 0x516   : > { %v4507_v9 = vpop.xlane.xlu1 %1733 }
 0x51a   : > { %v4509_v60 = vpop.xlane.xlu1 %1739 }
 0x53e   : > { %v1080_v10 = vpop.xlane.xlu1 %1079 }
 0x53f   : > { %v1077_v7 = vpop.xlane.xlu0 %1076 }
 0x540   : > { %3810 = vrcp.f32 %v1077_v7 }
 0x541   : > { %3812 = vrcp.f32 %v1080_v10 }
 0x543   : > { %v1086_v11 = vpop.xlane.xlu0 %1085 }
 0x547   : > { %v1083_v16 = vpop.xlane.xlu0 %1082 }
 0x548   : > { %3814 = vrcp.f32 %v1083_v16 }
 0x549   : > { %v1089_v23 = vpop.xlane.xlu1 %1088  ;;  %3816 = vrcp.f32 %v1086_v11 }
 0x54a   : > { %3818 = vrcp.f32 %v1089_v23  ;;  %v3811_v24 = vpop.eup %3810 }
 0x54b   : > { %v1092_v21 = vpop.xlane.xlu0 %1091  ;;  %v3813_v44 = vpop.eup %3812 }
 0x54c   : > { %3820 = vrcp.f32 %v1092_v21 }
 0x54d   : > { %v4511_v28 = vpop.xlane.xlu1 %1742  ;;  %3822 = vrcp.f32 %v642_v42 }
 0x54f   : > { %v1098_v26 = vpop.xlane.xlu0 %1097 }
 0x551   : > { %v1095_v2 = vpop.xlane.xlu1 %1094 }
 0x552   : > { %3824 = vrcp.f32 %v1095_v2  ;;  %v3815_v32 = vpop.eup %3814 }
 0x553   : > { %v3740_v31 = vpop.permute.xlu0 %3739  ;;  %3826 = vrcp.f32 %v1098_v26  ;;  %v3817_v8 = vpop.eup %3816 }
 0x554   : > { %v3742_v4 = vunpack.i.h.bf16 %v3740_v31  ;;  %v3741_v29 = vunpack.i.l.bf16 %v3740_v31  ;;  %3828 = vrcp.f32 %v645_v35  ;;  %v3819_v48 = vpop.eup %3818 }
 0x555   : > { %3830 = vrcp.f32 %v648_v45  ;;  %v3745_v21 = vpop.permute.xlu1 %3744 }
 0x556   : > { %v3511_v39 = vpack.c.bf16 %v3742_v4, %v3741_v29  ;;  %v3821_v42 = vpop.eup %3820  ;;  %3832 = vrcp.f32 %v651_v37  ;;  %v1744_v37 = vsub.f32 %v4387_v15, %v4501_v3  ;;  %v1746_v4 = vsub.f32 %v4403_v40, %v4505_v6 }
 0x557   : > { %3834 = vrcp.f32 %v654_v59  ;;  %v3823_v16 = vpop.eup %3822  ;;  %v1748_v40 = vsub.f32 %v4414_v58, %v4507_v9 }
 0x558   : > { %3836 = vrcp.f32 %v4491_v43  ;;  %v825_v31 = vmul.f32 %v3823_v16, %v4272_v50  ;;  %v1745_v43 = vsub.f32 %v4377_v36, %v4495_v61  ;;  %v1752_v3 = vmul.f32 1.442695, %v1744_v37 }
 0x559   : > { %3838 = vrcp.f32 %v4497_v62  ;;  %v3750_v62 = vpop.permute.xlu0 %3749  ;;  %v1747_v36 = vsub.f32 %v4391_v19, %v4499_v1  ;;  %v3755_v61 = vpop.permute.xlu1 %3754  ;;  %v1749_v1 = vsub.f32 %v4405_v41, %v4503_v5  ;;  %v1751_v5 = vsub.f32 %v4447_v18, %v4511_v28 }
 0x55a   : > { %3840 = vrcp.f32 %v4493_v46 }
 0x55b   : > { %3842 = vpow2.f32 %v1752_v3  ;;  %v1758_v19 = vmul.f32 1.442695, %v1747_v36  ;;  %v1762_v41 = vmul.f32 1.442695, %v1749_v1  ;;  %v403_v1 = vld [vmem:[%s4741_s4 + $0x10] sm:$0xff] }
 0x592   : > { %v3221_v33 = vpop.f32.mrb[8].mxu1 }
 0x593   : > { %v1221_v57 = vpop.f32.mrb[9].mxu1  ;;  %v1261_v14 = vmul.f32 %v3813_v44, %v3221_v33  ;;  %v3747_v33 = vunpack.i.h.bf16 %v3745_v21  ;;  %v3752_v44 = vunpack.i.h.bf16 %v3750_v62 }
 0x594   : > { %v1260_v63 = vmul.f32 %v3811_v24, %v1221_v57  ;;  %v3746_v24 = vunpack.i.l.bf16 %v3745_v21  ;;  %v2897_v21 = vld [vmem:[%s4740_s3 + $0xd8] sm:$0xff] }
 0x596   : > { %v3224_v13 = vpop.f32.mrb[10].mxu1  ;;  %3233 = vmatprep.mubr.msk.f32.mxu1 %vm429_vm1, %v1260_v63  ;;  %v3515_v57 = vpack.c.bf16 %v3747_v33, %v3746_v24  ;;  %v3751_v63 = vunpack.i.l.bf16 %v3750_v62  ;;  %v2898_v33 = vld [vmem:[%s4740_s3 + $0xe0] sm:$0xff] }
 0x597   : > { %v1231_v17 = vpop.f32.mrb[11].mxu1  ;;  %3234 = vmatmul.mubr.msk.f32.vlgmr.msra.gmra.mrb[16].mxu1 %vm429_vm1, %v1261_v14  ;;  %v1263_v38 = vmul.f32 %v3817_v8, %v3224_v13  ;;  %v1754_v14 = vmul.f32 1.442695, %v1745_v43  ;;  %v3757_v8 = vunpack.i.h.bf16 %v3755_v61 }
 0x598   : > { %v1262_v22 = vmul.f32 %v3815_v32, %v1231_v17  ;;  %3246 = vmatpush3.msra.mxu1 %v401_v12  ;;  %v3825_v12 = vpop.eup %3824  ;;  %v3519_v17 = vpack.c.bf16 %v3752_v44, %v3751_v63  ;;  %v2900_v63 = vld [vmem:[%s4740_s3 + $0xf0] sm:$0xff] }
 0x599   : > { %3512 = vmatprep.subr.bf16.mxu1 %v3511_v39  ;;  %v3827_v45 = vpop.eup %3826  ;;  %3844 = vpow2.f32 %v1754_v14 }
 0x59a   : > { %v3227_v47 = vpop.f32.mrb[12].mxu1  ;;  %3236 = vmatprep.mubr.msk.f32.mxu1 %vm429_vm1, %v1262_v22  ;;  %v3829_v26 = vpop.eup %3828  ;;  %v3756_v22 = vunpack.i.l.bf16 %v3755_v61 }
 0x59b   : > { %v1241_v27 = vpop.f32.mrb[13].mxu1  ;;  %3237 = vmatmul.mubr.msk.f32.gmra.mrb[18].mxu1 %vm429_vm1, %v1263_v38  ;;  %v1265_v11 = vmul.f32 %v3821_v42, %v3227_v47  ;;  %v3831_v2 = vpop.eup %3830  ;;  %v826_v15 = vmul.f32 %v3829_v26, %v4270_v49  ;;  %v1756_v49 = vmul.f32 1.442695, %v1746_v4  ;;  %v2895_v42 = vld [vmem:[%s4740_s3 + $0xc8] sm:$0xff] }
 0x59c   : > { %v1264_v7 = vmul.f32 %v3819_v48, %v1241_v27  ;;  %v3833_v50 = vpop.eup %3832  ;;  %v827_v29 = vmul.f32 %v3831_v2, %v4276_v52  ;;  %v3523_v38 = vpack.c.bf16 %v3757_v8, %v3756_v22  ;;  %v2899_v4 = vld [vmem:[%s4740_s3 + $0xe8] sm:$0xff] }
 0x59d   : > { %v3835_v46 = vpop.eup %3834  ;;  %v828_v52 = vmul.f32 %v3833_v50, %v4274_v51  ;;  %3846 = vpow2.f32 %v1756_v49  ;;  %v1760_v51 = vmul.f32 1.442695, %v1748_v40 }
 0x59e   : > { %v3230_v10 = vpop.f32.mrb[14].mxu1  ;;  %3239 = vmatprep.mubr.msk.f32.mxu1 %vm429_vm1, %v1264_v7  ;;  %v3837_v6 = vpop.eup %3836  ;;  %v829_v13 = vmul.f32 %v3835_v46, %v4280_v54  ;;  %v1750_v54 = vsub.f32 %v4421_v0, %v4509_v60  ;;  %3848 = vpow2.f32 %v1758_v19 }
 0x59f   : > { %v1251_v35 = vpop.f32.mrb[15].mxu1  ;;  %3240 = vmatmul.mubr.msk.f32.gmra.mrb[20].mxu1 %vm429_vm1, %v1265_v11  ;;  %v1267_v59 = vmul.f32 %v3827_v45, %v3230_v10  ;;  %v3839_v32 = vpop.eup %3838  ;;  %v830_v9 = vmul.f32 %v3837_v6, %v4278_v53  ;;  %v2894_v53 = vld [vmem:[%s4740_s3 + $0xc0] sm:$0xff]  ;;  %3850 = vpow2.f32 %v1760_v51  ;;  %v2896_v10 = vld [vmem:[%s4740_s3 + $0xd0] sm:$0xff] }
 0x5a0   : > { %v1266_v23 = vmul.f32 %v3825_v12, %v1251_v35  ;;  %v3841_v58 = vpop.eup %3840  ;;  %3852 = vpow2.f32 %v1762_v41 }
 0x5a1   : > { %v832_v0 = vmul.f32 %v3841_v58, %v4282_v55  ;;  %v4561_v18 = vpop.eup %3842  ;;  %v1766_v55 = vmul.f32 1.442695, %v1751_v5 }
 0x5a2   : > { %3242 = vmatprep.mubr.msk.f32.mxu1 %vm429_vm1, %v1266_v23  ;;  %v1768_v58 = vsel %vm591_vm3, %v4561_v18, 0.0 }
 0x5a3   : > { %3243 = vmatmul.mubr.msk.f32.gmra.mrb[22].mxu1 %vm429_vm1, %v1267_v59  ;;  %v3845_v23 = vpop.eup %3844 }
 0x5a4   : > { %3247 = vmatprep.mubr.msk.f32.mxu1 %vm429_vm1, %v825_v31 }
 0x5a7   : > { %3248 = vmatmul.mubr.msk.f32.vlgmr.msra.gmra.mrb[16].mxu1 %vm429_vm1, %v826_v15  ;;  %v3847_v37 = vpop.eup %3846 }
 0x5a8   : > { %3514 = vmatpush3.bf16.msra.mxu1 %v3511_v39  ;;  %3250 = vmatprep.mubr.msk.f32.mxu1 %vm429_vm1, %v827_v29  ;;  %v831_v39 = vmul.f32 %v3839_v32, %v4284_v56  ;;  %v1764_v56 = vmul.f32 1.442695, %v1750_v54  ;;  %v3849_v3 = vpop.eup %3848  ;;  %v1771_v54 = vsel %vm591_vm3, %v3845_v23, 0.0 }
 0x5a9   : > { %3516 = vmatprep.subr.bf16.mxu1 %v3515_v57  ;;  %v3851_v50 = vpop.eup %3850  ;;  %v1777_v51 = vsel %vm591_vm3, %v3849_v3, 0.0 }
 0x5aa   : > { %3854 = vpow2.f32 %v1764_v56  ;;  %v3853_v40 = vpop.eup %3852 }
 0x5ab   : > { %3251 = vmatmul.mubr.msk.f32.gmra.mrb[18].mxu1 %vm429_vm1, %v828_v52  ;;  %3856 = vpow2.f32 %v1766_v55  ;;  %v2901_v52 = vld [vmem:[%s4740_s3 + $0xf8] sm:$0xff] }
 0x5ac   : > { %3518 = vmatpush3.bf16.msra.mxu1 %v3515_v57  ;;  %3253 = vmatprep.mubr.msk.f32.mxu1 %vm429_vm1, %v829_v13 }
 0x5ad   : > { %3520 = vmatprep.subr.bf16.mxu1 %v3519_v17  ;;  %v3347_v47 = vpop.f32.mrb[32].mxu0 }
 0x5ae   : > { %v2228_v48 = vpop.f32.mrb[33].mxu0  ;;  %v2268_v60 = vmul.f32 0.35355338, %v3347_v47 }
 0x5af   : > { %3254 = vmatmul.mubr.msk.f32.gmra.mrb[20].mxu1 %vm429_vm1, %v830_v9  ;;  %v2267_v27 = vmul.f32 0.35355338, %v2228_v48  ;;  %v1783_v9 = vsel %vm591_vm3, %v3853_v40, 0.0 }
 0x5b0   : > { %3522 = vmatpush3.bf16.msra.mxu1 %v3519_v17  ;;  %3256 = vmatprep.mubr.msk.f32.mxu1 %vm429_vm1, %v831_v39  ;;  %v4573_v45 = vadd.f32 %v2895_v42, %v2268_v60  ;;  %v1774_v39 = vsel %vm591_vm3, %v3847_v37, 0.0 }
 0x5b1   : > { %3524 = vmatprep.subr.bf16.mxu1 %v3523_v38  ;;  %v3350_v28 = vpop.f32.mrb[34].mxu0  ;;  %v4564_v7 = vadd.f32 %v2894_v53, %v2267_v27 }
 0x5b2   : > { %v2270_v11 = vmul.f32 0.35355338, %v3350_v28  ;;  %v2238_v16 = vpop.f32.mrb[35].mxu0  ;;  %v2295_v62 = vsel %vm591_vm3, %v4573_v45, -inf }
 0x5b3   : > { %3257 = vmatmul.mubr.msk.f32.gmra.mrb[22].mxu1 %vm429_vm1, %v832_v0  ;;  %v2269_v12 = vmul.f32 0.35355338, %v2238_v16  ;;  %v2292_v35 = vsel %vm591_vm3, %v4564_v7, -inf }
 0x5b4   : > { %3526 = vmatpush3.bf16.msra.mxu1 %v3523_v38  ;;  %3303 = vmatprep.mubr.msk.f32.mxu1 %vm591_vm3, %v4561_v18  ;;  %v4582_v2 = vadd.f32 %v2897_v21, %v2270_v11  ;;  %v3855_v6 = vpop.eup %3854 }
 0x5b5   : > { %2293 = vmax.xlane.f32.xlu0 %v2292_v35  ;;  %v3353_v59 = vpop.f32.mrb[36].mxu0  ;;  %v4579_v26 = vadd.f32 %v2896_v10, %v2269_v12  ;;  %v3857_v22 = vpop.eup %3856  ;;  %3315 = vmatprep.subr.mxu1 %v403_v1  ;;  %v1786_v38 = vsel %vm591_vm3, %v3855_v6, 0.0 }
 0x5b6   : > { %v2248_v31 = vpop.f32.mrb[37].mxu0  ;;  %v2272_v24 = vmul.f32 0.35355338, %v3353_v59  ;;  %v2301_v44 = vsel %vm591_vm3, %v4582_v2, -inf }
 0x5b7   : > { %3304 = vmatmul.mubr.msk.f32.vlgmr.msra.gmra.mrb[24].mxu1 %vm591_vm3, %v3845_v23  ;;  %v2271_v43 = vmul.f32 0.35355338, %v2248_v31  ;;  %v2298_v15 = vsel %vm591_vm3, %v4579_v26, -inf }
 0x5b8   : > { %3306 = vmatprep.mubr.msk.f32.mxu1 %vm591_vm3, %v3847_v37  ;;  %2299 = vmax.xlane.f32.xlu1 %v2298_v15  ;;  %v4603_v14 = vadd.f32 %v2899_v4, %v2272_v24 }
 0x5b9   : > { %2296 = vmax.xlane.f32.xlu0 %v2295_v62  ;;  %v3356_v29 = vpop.f32.mrb[38].mxu0  ;;  %v4595_v46 = vadd.f32 %v2898_v33, %v2271_v43  ;;  %3316 = vmatpush3.msra.mxu1 %v403_v1 }
 0x5ba   : > { %v2258_v57 = vpop.f32.mrb[39].mxu0  ;;  %v2274_v36 = vmul.f32 0.35355338, %v3356_v29  ;;  %v2307_v17 = vsel %vm591_vm3, %v4603_v14, -inf }
 0x5bb   : > { %3307 = vmatmul.mubr.msk.f32.gmra.mrb[26].mxu1 %vm591_vm3, %v3849_v3  ;;  %v2273_v61 = vmul.f32 0.35355338, %v2258_v57  ;;  %v2304_v49 = vsel %vm591_vm3, %v4595_v46, -inf }
 0x5bc   : > { %3309 = vmatprep.mubr.msk.f32.mxu1 %vm591_vm3, %v3851_v50  ;;  %2305 = vmax.xlane.f32.xlu1 %v2304_v49  ;;  %v4612_v32 = vadd.f32 %v2901_v52, %v2274_v36 }
 0x5bd   : > { %2302 = vmax.xlane.f32.xlu0 %v2301_v44  ;;  %v2290_v13 = vadd.f32 %v2900_v63, %v2273_v61 }
 0x5be   : > { %v2313_v19 = vsel %vm591_vm3, %v4612_v32, -inf }
 0x5bf   : > { %3310 = vmatmul.mubr.msk.f32.gmra.mrb[28].mxu1 %vm591_vm3, %v3853_v40  ;;  %v2310_v8 = vsel %vm591_vm3, %v2290_v13, -inf }
 0x5c0   : > { %3312 = vmatprep.mubr.msk.f32.mxu1 %vm591_vm3, %v3855_v6  ;;  %2311 = vmax.xlane.f32.xlu1 %v2310_v8 }
 0x5c1   : > { %2308 = vmax.xlane.f32.xlu0 %v2307_v17 }
 0x5c3   : > { %3313 = vmatmul.mubr.msk.f32.gmra.mrb[30].mxu1 %vm591_vm3, %v3857_v22 }
 0x5c4   : > { %2314 = vmax.xlane.f32.xlu1 %v2313_v19 }
 0x5d5   : > { %3764 = vrot.lane.b32.xlu1 %v4016_v25, %s3924_s9  ;;  %v1780_v25 = vsel %vm591_vm3, %v3851_v50, 0.0 }
 0x5d7   : > { %3759 = vrot.lane.b32.xlu0 %v4007_v20, %s3924_s9  ;;  %v1789_v20 = vsel %vm591_vm3, %v3857_v22, 0.0 }
 0x5f6   : > { %1769 = vadd.xlane.f32.xlu0 %v1768_v58 }
 0x5f9   : > { %1772 = vadd.xlane.f32.xlu1 %v1771_v54 }
 0x5fa   : > { %1778 = vadd.xlane.f32.xlu0 %v1777_v51 }
 0x5fd   : > { %1775 = vadd.xlane.f32.xlu1 %v1774_v39 }
 0x5fe   : > { %1784 = vadd.xlane.f32.xlu0 %v1783_v9 }
 0x601   : > { %1781 = vadd.xlane.f32.xlu1 %v1780_v25 }
 0x602   : > { %1790 = vadd.xlane.f32.xlu0 %v1789_v20 }
 0x605   : > { %1787 = vadd.xlane.f32.xlu1 %v1786_v38 }
 0x616   : > { %3774 = vrot.lane.b32.xlu1 %v4035_v34, %s3924_s9 }
 0x618   : > { %3769 = vrot.lane.b32.xlu0 %v4025_v30, %s3924_s9 }
 0x642   : > { %v2294_v47 = vpop.xlane.xlu0 %2293 }
 0x643   : > { %v2316_v41 = vsub.f32 %v4564_v7, %v2294_v47 }
 0x645   : > { %v2324_v5 = vmul.f32 1.442695, %v2316_v41  ;;  %v2300_v0 = vpop.xlane.xlu1 %2299 }
 0x646   : > { %v2297_v48 = vpop.xlane.xlu0 %2296  ;;  %v2318_v56 = vsub.f32 %v4579_v26, %v2300_v0 }
 0x647   : > { %3858 = vpow2.f32 %v2324_v5  ;;  %v2317_v53 = vsub.f32 %v4573_v45, %v2297_v48 }
 0x648   : > { %v2328_v27 = vmul.f32 1.442695, %v2318_v56 }
 0x649   : > { %v2326_v60 = vmul.f32 1.442695, %v2317_v53  ;;  %v2306_v18 = vpop.xlane.xlu1 %2305 }
 0x64a   : > { %v2303_v42 = vpop.xlane.xlu0 %2302  ;;  %v2320_v30 = vsub.f32 %v4595_v46, %v2306_v18 }
 0x64b   : > { %3860 = vpow2.f32 %v2326_v60  ;;  %v2319_v34 = vsub.f32 %v4582_v2, %v2303_v42 }
 0x64c   : > { %3862 = vpow2.f32 %v2328_v27  ;;  %v2332_v7 = vmul.f32 1.442695, %v2320_v30 }
 0x64d   : > { %v2330_v28 = vmul.f32 1.442695, %v2319_v34  ;;  %v2312_v11 = vpop.xlane.xlu1 %2311 }
 0x64e   : > { %v2309_v55 = vpop.xlane.xlu0 %2308  ;;  %v2322_v10 = vsub.f32 %v2290_v13, %v2312_v11 }
 0x64f   : > { %3864 = vpow2.f32 %v2330_v28  ;;  %v2321_v16 = vsub.f32 %v4603_v14, %v2309_v55 }
 0x650   : > { %3866 = vpow2.f32 %v2332_v7  ;;  %v2336_v45 = vmul.f32 1.442695, %v2322_v10 }
 0x651   : > { %v3859_v12 = vpop.eup %3858  ;;  %v2334_v35 = vmul.f32 1.442695, %v2321_v16  ;;  %v2315_v23 = vpop.xlane.xlu1 %2314 }
 0x652   : > { %3373 = vmatprep.mubr.msk.f32.mxu0 %vm591_vm3, %v3859_v12  ;;  %v3760_v21 = vpop.permute.xlu0 %3759  ;;  %v2340_v37 = vsel %vm591_vm3, %v3859_v12, 0.0  ;;  %v2323_v31 = vsub.f32 %v4612_v32, %v2315_v23 }
 0x653   : > { %3868 = vpow2.f32 %v2334_v35  ;;  %v3762_v59 = vunpack.i.h.bf16 %v3760_v21  ;;  %v3761_v26 = vunpack.i.l.bf16 %v3760_v21  ;;  %2341 = vadd.xlane.f32.xlu0 %v2340_v37  ;;  %v404_v37 = vld [vmem:[%s4741_s4 + $0x18] sm:$0xff] }
 0x654   : > { %3870 = vpow2.f32 %v2336_v45  ;;  %v2338_v24 = vmul.f32 1.442695, %v2323_v31 }
 0x655   : > { %v4645_v2 = vpop.eup %3860  ;;  %v4647_v33 = vpack.c.bf16 %v3762_v59, %v3761_v26  ;;  %v3765_v62 = vpop.permute.xlu1 %3764 }
 0x656   : > { %v4649_v43 = vpop.eup %3862  ;;  %v2343_v15 = vsel %vm591_vm3, %v4645_v2, 0.0  ;;  %3872 = vpow2.f32 %v2338_v24  ;;  %v3767_v3 = vunpack.i.h.bf16 %v3765_v62  ;;  %v3766_v4 = vunpack.i.l.bf16 %v3765_v62 }
 0x657   : > { %3552 = vmatprep.subr.bf16.mxu0 %v4647_v33  ;;  %2344 = vadd.xlane.f32.xlu1 %v2343_v15  ;;  %v2346_v50 = vsel %vm591_vm3, %v4649_v43, 0.0 }
 0x658   : > { %2347 = vadd.xlane.f32.xlu0 %v2346_v50  ;;  %3567 = vmatprep.subr.bf16.mxu1 %v4647_v33  ;;  %v4659_v46 = vpack.c.bf16 %v3767_v3, %v3766_v4 }
 0x659   : > { %v4657_v29 = vpop.eup %3864  ;;  %3554 = vmatpush3.bf16.msra.mxu0 %v4647_v33 }
 0x65a   : > { %v4662_v57 = vpop.eup %3866  ;;  %v2349_v44 = vsel %vm591_vm3, %v4657_v29, 0.0  ;;  %3556 = vmatprep.subr.bf16.mxu0 %v4659_v46 }
 0x65b   : > { %v2352_v63 = vsel %vm591_vm3, %v4662_v57, 0.0 }
 0x65c   : > { %2350 = vadd.xlane.f32.xlu0 %v2349_v44  ;;  %2353 = vadd.xlane.f32.xlu1 %v2352_v63 }
 0x65d   : > { %v4669_v14 = vpop.eup %3868  ;;  %3558 = vmatpush3.bf16.msra.mxu0 %v4659_v46 }
 0x65e   : > { %v4672_v36 = vpop.eup %3870  ;;  %v2355_v61 = vsel %vm591_vm3, %v4669_v14, 0.0 }
 0x65f   : > { %v2358_v49 = vsel %vm591_vm3, %v4672_v36, 0.0 }
 0x660   : > { %2356 = vadd.xlane.f32.xlu0 %v2355_v61  ;;  %2359 = vadd.xlane.f32.xlu1 %v2358_v49  ;;  %v4678_v40 = vpop.eup %3872 }
 0x661   : > { %v2361_v52 = vsel %vm591_vm3, %v4678_v40, 0.0 }
 0x664   : > { %2362 = vadd.xlane.f32.xlu0 %v2361_v52 }
 0x683   : > { %v1770_v6 = vpop.xlane.xlu0 %1769 }
 0x684   : > { %3874 = vrcp.f32 %v1770_v6 }
 0x686   : > { %v1773_v32 = vpop.xlane.xlu1 %1772 }
 0x687   : > { %v1779_v13 = vpop.xlane.xlu0 %1778  ;;  %3876 = vrcp.f32 %v1773_v32 }
 0x688   : > { %3878 = vrcp.f32 %v1779_v13 }
 0x68a   : > { %v3305_v17 = vpop.f32.mrb[24].mxu1  ;;  %v1776_v19 = vpop.xlane.xlu1 %1775 }
 0x68b   : > { %v1914_v8 = vpop.f32.mrb[25].mxu1  ;;  %v1785_v22 = vpop.xlane.xlu0 %1784  ;;  %3880 = vrcp.f32 %v1776_v19 }
 0x68c   : > { %3882 = vrcp.f32 %v1785_v22 }
 0x68e   : > { %v3308_v1 = vpop.f32.mrb[26].mxu1  ;;  %v3875_v58 = vpop.eup %3874 }
 0x68f   : > { %v1924_v51 = vpop.f32.mrb[27].mxu1  ;;  %v1953_v54 = vmul.f32 %v3875_v58, %v1914_v8  ;;  %v1791_v9 = vpop.xlane.xlu0 %1790 }
 0x690   : > { %v1782_v39 = vpop.xlane.xlu1 %1781 }
 0x691   : > { %3884 = vrcp.f32 %v1782_v39  ;;  %3317 = vmatprep.mubr.msk.f32.mxu1 %vm429_vm1, %v1953_v54  ;;  %v3877_v38 = vpop.eup %3876 }
 0x692   : > { %v3311_v25 = vpop.f32.mrb[28].mxu1  ;;  %v1954_v5 = vmul.f32 %v3877_v38, %v3305_v17  ;;  %v3879_v56 = vpop.eup %3878 }
 0x693   : > { %v1934_v20 = vpop.f32.mrb[29].mxu1  ;;  %v3770_v47 = vpop.permute.xlu0 %3769  ;;  %v1956_v55 = vmul.f32 %v3879_v56, %v3308_v1 }
 0x694   : > { %v1788_v41 = vpop.xlane.xlu1 %1787  ;;  %v3772_v48 = vunpack.i.h.bf16 %v3770_v47  ;;  %v3771_v0 = vunpack.i.l.bf16 %v3770_v47  ;;  %3318 = vmatmul.mubr.msk.f32.vlgmr.msra.gmra.mrb[16].mxu1 %vm429_vm1, %v1954_v5 }
 0x695   : > { %3886 = vrcp.f32 %v1788_v41  ;;  %v3881_v42 = vpop.eup %3880  ;;  %3571 = vmatpush3.bf16.msra.mxu1 %v4647_v33 }
 0x696   : > { %3888 = vrcp.f32 %v1791_v9  ;;  %v3314_v53 = vpop.f32.mrb[30].mxu1  ;;  %v3559_v60 = vpack.c.bf16 %v3772_v48, %v3771_v0  ;;  %v1955_v34 = vmul.f32 %v3881_v42, %v1924_v51  ;;  %3568 = vmatprep.subr.bf16.mxu1 %v4659_v46  ;;  %v3883_v7 = vpop.eup %3882  ;;  %v2918_v51 = vld [vmem:[%s4742_s5] ss:$0 sm:$0xff] }
 0x697   : > { %v1944_v27 = vpop.f32.mrb[31].mxu1  ;;  %v1958_v35 = vmul.f32 %v3883_v7, %v3311_v25 }
 0x698   : > { %v3775_v18 = vpop.permute.xlu1 %3774  ;;  %3560 = vmatprep.subr.bf16.mxu0 %v3559_v60  ;;  %3320 = vmatprep.mubr.msk.f32.mxu1 %vm429_vm1, %v1955_v34 }
 0x699   : > { %v3777_v30 = vunpack.i.h.bf16 %v3775_v18  ;;  %v3776_v28 = vunpack.i.l.bf16 %v3775_v18  ;;  %3562 = vmatpush3.bf16.msra.mxu0 %v3559_v60  ;;  %3572 = vmatpush3.bf16.msra.mxu1 %v4659_v46 }
 0x69a   : > { %3321 = vmatmul.mubr.msk.f32.gmra.mrb[18].mxu1 %vm429_vm1, %v1956_v55  ;;  %3569 = vmatprep.subr.bf16.mxu1 %v3559_v60 }
 0x69b   : > { %v3563_v11 = vpack.c.bf16 %v3777_v30, %v3776_v28  ;;  %v3885_v16 = vpop.eup %3884 }
 0x69c   : > { %v1957_v10 = vmul.f32 %v3885_v16, %v1934_v20 }
 0x69d   : > { %3564 = vmatprep.subr.bf16.mxu0 %v3563_v11  ;;  %3573 = vmatpush3.bf16.msra.mxu1 %v3559_v60 }
 0x69e   : > { %3323 = vmatprep.mubr.msk.f32.mxu1 %vm429_vm1, %v1957_v10  ;;  %3566 = vmatpush3.bf16.msra.mxu0 %v3563_v11 }
 0x69f   : > { %v3887_v12 = vpop.eup %3886  ;;  %3324 = vmatmul.mubr.msk.f32.gmra.mrb[20].mxu1 %vm429_vm1, %v1958_v35  ;;  %3570 = vmatprep.subr.bf16.mxu1 %v3563_v11 }
 0x6a0   : > { %v3889_v45 = vpop.eup %3888  ;;  %v1959_v21 = vmul.f32 %v3887_v12, %v1944_v27 }
 0x6a1   : > { %3374 = vmatmul.mubr.msk.f32.vlgmr.msra.gmra.mrb[40].mxu0 %vm591_vm3, %v4645_v2  ;;  %v1960_v23 = vmul.f32 %v3889_v45, %v3314_v53  ;;  %3574 = vmatpush3.bf16.msra.mxu1 %v3563_v11 }
 0x6a2   : > { %3326 = vmatprep.mubr.msk.f32.mxu1 %vm429_vm1, %v1959_v21  ;;  %3376 = vmatprep.mubr.msk.f32.mxu0 %vm591_vm3, %v4649_v43 }
 0x6a3   : > { %3327 = vmatmul.mubr.msk.f32.gmra.mrb[22].mxu1 %vm429_vm1, %v1960_v23  ;;  %3385 = vmatprep.subr.mxu1 %v404_v37 }
 0x6a4   : > { %3382 = vmatprep.mubr.msk.f32.mxu1 %vm591_vm3, %v4672_v36 }
 0x6a5   : > { %3377 = vmatmul.mubr.msk.f32.gmra.mrb[42].mxu0 %vm591_vm3, %v4657_v29 }
 0x6a6   : > { %3379 = vmatprep.mubr.msk.f32.mxu0 %vm591_vm3, %v4662_v57 }
 0x6a7   : > { %3383 = vmatmul.mubr.msk.f32.vlgmr.msra.gmra.mrb[32].mxu1 %vm591_vm3, %v4678_v40 }
 0x6a8   : > { %3386 = vmatpush3.msra.mxu1 %v404_v37 }
 0x6a9   : > { %3380 = vmatmul.mubr.msk.f32.gmra.mrb[44].mxu0 %vm591_vm3, %v4669_v14 }
 0x6e0   : > { %v2342_v59 = vpop.xlane.xlu0 %2341 }
 0x6e1   : > { %3890 = vrcp.f32 %v2342_v59 }
 0x6e4   : > { %v2345_v31 = vpop.xlane.xlu1 %2344 }
 0x6e5   : > { %v2348_v26 = vpop.xlane.xlu0 %2347  ;;  %3892 = vrcp.f32 %v2345_v31 }
 0x6e6   : > { %3894 = vrcp.f32 %v2348_v26 }
 0x6e9   : > { %v2351_v2 = vpop.xlane.xlu0 %2350  ;;  %v2354_v33 = vpop.xlane.xlu1 %2353 }
 0x6ea   : > { %3896 = vrcp.f32 %v2351_v2 }
 0x6eb   : > { %3898 = vrcp.f32 %v2354_v33  ;;  %v3891_v15 = vpop.eup %3890 }
 0x6ed   : > { %v2357_v24 = vpop.xlane.xlu0 %2356  ;;  %v2360_v43 = vpop.xlane.xlu1 %2359 }
 0x6ee   : > { %3900 = vrcp.f32 %v2357_v24 }
 0x6ef   : > { %3902 = vrcp.f32 %v2360_v43  ;;  %v3893_v50 = vpop.eup %3892 }
 0x6f0   : > { %v3895_v44 = vpop.eup %3894 }
 0x6f1   : > { %v2363_v3 = vpop.xlane.xlu0 %2362 }
 0x6f2   : > { %3904 = vrcp.f32 %v2363_v3 }
 0x6f4   : > { %v3897_v14 = vpop.eup %3896 }
 0x6f5   : > { %v3899_v6 = vpop.eup %3898 }
 0x6f8   : > { %v3901_v32 = vpop.eup %3900 }
 0x6f9   : > { %v3903_v8 = vpop.eup %3902 }
 0x6fc   : > { %v3905_v1 = vpop.eup %3904 }
 0x774   : > { %v3375_v62 = vpop.f32.mrb[40].mxu0 }
 0x775   : > { %v2486_v4 = vpop.f32.mrb[41].mxu0  ;;  %v2526_v46 = vmul.f32 %v3893_v50, %v3375_v62 }
 0x776   : > { %v2525_v29 = vmul.f32 %v3891_v15, %v2486_v4 }
 0x778   : > { %v3378_v57 = vpop.f32.mrb[42].mxu0  ;;  %3387 = vmatprep.mubr.msk.f32.mxu1 %vm429_vm1, %v2525_v29 }
 0x779   : > { %v2496_v63 = vpop.f32.mrb[43].mxu0  ;;  %3388 = vmatmul.mubr.msk.f32.vlgmr.msra.gmra.mrb[16].mxu1 %vm429_vm1, %v2526_v46  ;;  %v2528_v61 = vmul.f32 %v3897_v14, %v3378_v57 }
 0x77a   : > { %v2527_v36 = vmul.f32 %v3895_v44, %v2496_v63  ;;  %v3384_v49 = vpop.f32.mrb[32].mxu1 }
 0x77b   : > { %v2516_v40 = vpop.f32.mrb[33].mxu1  ;;  %v2532_v58 = vmul.f32 %v3905_v1, %v3384_v49 }
 0x77c   : > { %v3381_v52 = vpop.f32.mrb[44].mxu0  ;;  %3390 = vmatprep.mubr.msk.f32.mxu1 %vm429_vm1, %v2527_v36  ;;  %v2531_v19 = vmul.f32 %v3903_v8, %v2516_v40 }
 0x77d   : > { %v2506_v13 = vpop.f32.mrb[45].mxu0  ;;  %3391 = vmatmul.mubr.msk.f32.gmra.mrb[18].mxu1 %vm429_vm1, %v2528_v61  ;;  %v2530_v22 = vmul.f32 %v3901_v32, %v3381_v52 }
 0x77e   : > { %v2529_v17 = vmul.f32 %v3899_v6, %v2506_v13 }
 0x780   : > { %3393 = vmatprep.mubr.msk.f32.mxu1 %vm429_vm1, %v2529_v17 }
 0x781   : > { %3394 = vmatmul.mubr.msk.f32.gmra.mrb[20].mxu1 %vm429_vm1, %v2530_v22 }
 0x782   : > { %3396 = vmatprep.mubr.msk.f32.mxu1 %vm429_vm1, %v2531_v19 }
 0x785   : > { %3397 = vmatmul.mubr.msk.f32.gmra.mrb[22].mxu1 %vm429_vm1, %v2532_v58 }
 0x84c   : > { %v3389_v54 = vpop.f32.mrb[16].mxu1 }
 0x84d   : > { %v2678_v9 = vadd.f32 %v3389_v54, %v2918_v51  ;;  %v2623_v39 = vpop.f32.mrb[17].mxu1 }
 0x84e   : > { %v2677_v25 = vadd.f32 %v2918_v51, %v2623_v39 }
 0x84f   : > { %2686 = vst.msk [vmem:[%s251_s16 + $0x8] sm:$0xff] %vm271_vm0, %v2678_v9 }
 0x850   : > { %2685 = vst.msk [vmem:[%s251_s16] sm:$0xff] %vm271_vm0, %v2677_v25  ;;  %v3392_v20 = vpop.f32.mrb[18].mxu1 }
 0x851   : > { %v2680_v38 = vadd.f32 %v3392_v20, %v2918_v51  ;;  %v2633_v47 = vpop.f32.mrb[19].mxu1 }
 0x852   : > { %v2679_v41 = vadd.f32 %v2918_v51, %v2633_v47 }
 0x853   : > { %2688 = vst.msk [vmem:[%s251_s16 + $0x18] sm:$0xff] %vm271_vm0, %v2680_v38 }
 0x854   : > { %2687 = vst.msk [vmem:[%s251_s16 + $0x10] sm:$0xff] %vm271_vm0, %v2679_v41  ;;  %v3395_v5 = vpop.f32.mrb[20].mxu1 }
 0x855   : > { %v2682_v48 = vadd.f32 %v3395_v5, %v2918_v51  ;;  %v2643_v0 = vpop.f32.mrb[21].mxu1 }
 0x856   : > { %v2681_v53 = vadd.f32 %v2918_v51, %v2643_v0 }
 0x857   : > { %2690 = vst.msk [vmem:[%s251_s16 + $0x28] sm:$0xff] %vm271_vm0, %v2682_v48 }
 0x858   : > { %2689 = vst.msk [vmem:[%s251_s16 + $0x20] sm:$0xff] %vm271_vm0, %v2681_v53  ;;  %v3398_v56 = vpop.f32.mrb[22].mxu1 }
 0x859   : > { %v2684_v60 = vadd.f32 %v3398_v56, %v2918_v51  ;;  %v2653_v27 = vpop.f32.mrb[23].mxu1 }
 0x85a   : > { %v2683_v42 = vadd.f32 %v2918_v51, %v2653_v27 }
 0x85b   : > { %2692 = vst.msk [vmem:[%s251_s16 + $0x38] sm:$0xff] %vm271_vm0, %v2684_v60 }
 0x85c   : > { %2691 = vst.msk [vmem:[%s251_s16 + $0x30] sm:$0xff] %vm271_vm0, %v2683_v42 }
 0x85d PF: > { %s16_s21 = sadd.s32 1, %s3912_s21  }
 0x85e   : > { %p13_p4 = scmp.ge.s32.totalorder %s16_s21, 4  }
 0x860   :  { %15 = sbr.rel (!%p13_p4) target bundleno = 1 (0x1), region = 77 }

</bundles_post_ra>
